<compile_context>
chip_gen: v7x
topology: tpu7x:2x2x1
jax: 0.10.0
libtpu: 0.0.40
codegen_flags: <defaults>
</compile_context>

<pallas_src>
import jax
import jax.numpy as jnp
from jax.experimental import pallas as pl
from jax.experimental.pallas import tpu as pltpu

LANE = 128
SUBLANE = 8


def _round_up(x, m):
    return (x + m - 1) // m * m


def _cdiv(a, b):
    return -(-a // b)


def _const_spec(shape):
    # Grid-invariant operand: same block every step -> resident in VMEM,
    # single-buffered (no point double-buffering something never re-fetched).
    return pl.BlockSpec(shape, lambda i: (0,) * len(shape),
                        pipeline_mode=pl.Buffered(1))


def _choose_tile_m(batch, d_in, n_out_streams, d_out_pad, h,
                   max_tile=1024, tile_budget_bytes=20 * 1024 * 1024):
    """Pick a batch tile: as large as VMEM allows, but keep >=2 grid steps."""
    # per-row bytes of pipelined buffers: double-buffered bf16 x tile,
    # double-buffered bf16 out tile(s), plus headroom for the f32/bf16 hidden
    # activations held in VMEM during the fused 3-layer compute.
    per_row = 2 * 2 * d_in + n_out_streams * (2 * 2 * d_out_pad + 6 * h)
    t = min(max_tile, tile_budget_bytes // max(per_row, 1))
    t = min(t, _round_up(batch, SUBLANE))
    if batch >= 2 * SUBLANE:
        # v7x has 2 TensorCores; the "parallel" batch axis is sharded across
        # them, so never collapse the grid to a single block.
        t = min(t, _round_up(_cdiv(batch, 2), SUBLANE))
    return max(SUBLANE, (t // SUBLANE) * SUBLANE)


# ---------------------------------------------------------------------------
# Pallas kernels
# ---------------------------------------------------------------------------
def _critic_mlp_kernel(x_ref, w1_ref, b1_ref, w2_ref, b2_ref, w3_ref, b3_ref,
                       o_ref):
    """Fused 3-layer MLP over one batch tile (single critic)."""
    x = x_ref[...]
    h = jnp.dot(x, w1_ref[...], preferred_element_type=jnp.float32) + b1_ref[...]
    h = jnp.maximum(h, 0.0).astype(jnp.bfloat16)
    h = jnp.dot(h, w2_ref[...], preferred_element_type=jnp.float32) + b2_ref[...]
    h = jnp.maximum(h, 0.0).astype(jnp.bfloat16)
    o = jnp.dot(h, w3_ref[...], preferred_element_type=jnp.float32) + b3_ref[...]
    o_ref[...] = o.astype(o_ref.dtype)


def _dual_critic_mlp_kernel(x_ref, w1_ref, b1_ref,
                            w2c_ref, b2c_ref, w3c_ref, b3c_ref,
                            w2t_ref, b2t_ref, w3t_ref, b3t_ref,
                            oc_ref, ot_ref):
    """critic + target_critic fused: x streamed once; layer-1 is one
    256-lane-wide MXU matmul over the concatenated [w1_c | w1_t]."""
    x = x_ref[...]
    h = jnp.dot(x, w1_ref[...], preferred_element_type=jnp.float32) + b1_ref[...]
    h = jnp.maximum(h, 0.0).astype(jnp.bfloat16)
    hdim = w2c_ref.shape[0]
    hc = h[:, :hdim]
    ht = h[:, hdim:]

    def head(hh, w2, b2, w3, b3):
        z = jnp.dot(hh, w2[...], preferred_element_type=jnp.float32) + b2[...]
        z = jnp.maximum(z, 0.0).astype(jnp.bfloat16)
        return jnp.dot(z, w3[...], preferred_element_type=jnp.float32) + b3[...]

    oc_ref[...] = head(hc, w2c_ref, b2c_ref, w3c_ref, b3c_ref).astype(oc_ref.dtype)
    ot_ref[...] = head(ht, w2t_ref, b2t_ref, w3t_ref, b3t_ref).astype(ot_ref.dtype)


# ---------------------------------------------------------------------------
# pallas_call wrappers
# ---------------------------------------------------------------------------
def _critic_forward_pallas(x_bf16, params, tile_m):
    """x_bf16: (B, d_in) bf16 -> (B, d_out_pad) bf16 (lane-dense)."""
    w1, b1, w2, b2, w3, b3 = params
    batch, d_in = x_bf16.shape
    h = w1.shape[1]
    d_out_pad = w3.shape[1]
    grid = (_cdiv(batch, tile_m),)

    flops = 2 * batch * (d_in * h + h * h + h * d_out_pad)
    bytes_accessed = (int(x_bf16.size) * x_bf16.dtype.itemsize
                      + sum(int(p.size) * p.dtype.itemsize for p in params)
                      + batch * d_out_pad * 2)

    return pl.pallas_call(
        _critic_mlp_kernel,
        out_shape=jax.ShapeDtypeStruct((batch, d_out_pad), jnp.bfloat16),
        grid=grid,
        in_specs=[
            pl.BlockSpec((tile_m, d_in), lambda i: (i, 0)),   # batch tile of x
            _const_spec(w1.shape), _const_spec(b1.shape),
            _const_spec(w2.shape), _const_spec(b2.shape),
            _const_spec(w3.shape), _const_spec(b3.shape),
        ],
        out_specs=pl.BlockSpec((tile_m, d_out_pad), lambda i: (i, 0)),
        compiler_params=pltpu.CompilerParams(
            dimension_semantics=("parallel",),
            vmem_limit_bytes=32 * 1024 * 1024,
        ),
        cost_estimate=pl.CostEstimate(
            flops=flops, transcendentals=0, bytes_accessed=bytes_accessed),
    )(x_bf16, w1, b1, w2, b2, w3, b3)


def _dual_critic_forward_pallas(x_bf16, w1d, b1d, c_tail, t_tail, tile_m):
    """Evaluate critic and target_critic on the same x in one pallas_call."""
    w2c, b2c, w3c, b3c = c_tail
    w2t, b2t, w3t, b3t = t_tail
    batch, d_in = x_bf16.shape
    h = w2c.shape[0]
    d_out_pad = w3c.shape[1]
    grid = (_cdiv(batch, tile_m),)

    flops = 2 * batch * (d_in * 2 * h + 2 * (h * h + h * d_out_pad))
    bytes_accessed = (int(x_bf16.size) * x_bf16.dtype.itemsize
                      + sum(int(p.size) * p.dtype.itemsize
                            for p in (w1d, b1d, *c_tail, *t_tail))
                      + 2 * batch * d_out_pad * 2)

    out_sds = jax.ShapeDtypeStruct((batch, d_out_pad), jnp.bfloat16)
    out_spec = pl.BlockSpec((tile_m, d_out_pad), lambda i: (i, 0))

    return pl.pallas_call(
        _dual_critic_mlp_kernel,
        out_shape=(out_sds, out_sds),
        grid=grid,
        in_specs=[
            pl.BlockSpec((tile_m, d_in), lambda i: (i, 0)),
            _const_spec(w1d.shape), _const_spec(b1d.shape),
            _const_spec(w2c.shape), _const_spec(b2c.shape),
            _const_spec(w3c.shape), _const_spec(b3c.shape),
            _const_spec(w2t.shape), _const_spec(b2t.shape),
            _const_spec(w3t.shape), _const_spec(b3t.shape),
        ],
        out_specs=(out_spec, pl.BlockSpec((tile_m, d_out_pad), lambda i: (i, 0))),
        compiler_params=pltpu.CompilerParams(
            dimension_semantics=("parallel",),
            vmem_limit_bytes=32 * 1024 * 1024,
        ),
        cost_estimate=pl.CostEstimate(
            flops=flops, transcendentals=0, bytes_accessed=bytes_accessed),
    )(x_bf16, w1d, b1d, w2c, b2c, w3c, b3c, w2t, b2t, w3t, b3t)


# ---------------------------------------------------------------------------
# CQL wrapper: critic + target_critic (target is an exact copy at init, as in
# target_critic.load_state_dict(self.critic.state_dict())).
# ---------------------------------------------------------------------------
class CQLPallas:
    def __init__(self, seq_len, feature_dim, embed_dim, output_dim, key,
                 max_tile_m=1024):
        d_in = seq_len * feature_dim
        self.seq_len = seq_len
        self.feature_dim = feature_dim
        self.output_dim = output_dim
        self.d_in = d_in                      # feature dim left unpadded (full-extent block)
        self.h_pad = _round_up(embed_dim, LANE)
        self.d_out_pad = _round_up(output_dim, LANE)   # lane-dense output block
        self.max_tile_m = max_tile_m

        k1, k2, k3 = jax.random.split(key, 3)

        def lin(k, fan_in, fan_out, pad_in, pad_out):
            # deterministic, PyTorch-Linear-like uniform init; zero-padded to
            # lane-aligned shapes (padding does not change the math).
            bound = 1.0 / float(fan_in) ** 0.5
            kw, kb = jax.random.split(k)
            w = jax.random.uniform(kw, (fan_in, fan_out), jnp.float32,
                                   -bound, bound)
            b = jax.random.uniform(kb, (1, fan_out), jnp.float32,
                                   -bound, bound)
            w = jnp.pad(w, ((0, pad_in - fan_in), (0, pad_out - fan_out)))
            b = jnp.pad(b, ((0, 0), (0, pad_out - fan_out)))
            return w.astype(jnp.bfloat16), b  # bf16 weights, f32 bias

        w1, b1 = lin(k1, d_in, embed_dim, d_in, self.h_pad)
        w2, b2 = lin(k2, embed_dim, embed_dim, self.h_pad, self.h_pad)
        w3, b3 = lin(k3, embed_dim, output_dim, self.h_pad, self.d_out_pad)

        self.critic_params = (w1, b1, w2, b2, w3, b3)
        # target_critic.load_state_dict(critic.state_dict()) -> identical copy
        self.target_critic_params = tuple(jnp.array(p)
                                          for p in self.critic_params)

        # Fused layer-1 weights for the two-critic path (fills the 256-wide
        # MXU on v6e/v7x and streams x from HBM once).
        # TODO(synk): rebuild these if critic / target weights are updated.
        self._w1_dual = jnp.concatenate(
            [self.critic_params[0], self.target_critic_params[0]], axis=1)
        self._b1_dual = jnp.concatenate(
            [self.critic_params[1], self.target_critic_params[1]], axis=1)

    def _flatten(self, x):
        B = x.shape[0]
        # single pass over x: reshape (layout) + cast to bf16; no pads.
        return x.reshape(B, self.d_in).astype(jnp.bfloat16)

    def __call__(self, x, use_target: bool = False):
        # x: (B, seq_len, feature_dim); forward through one critic (module spec)
        x_flat = self._flatten(x)
        B = x_flat.shape[0]
        tile_m = _choose_tile_m(B, self.d_in, 1, self.d_out_pad, self.h_pad,
                                max_tile=self.max_tile_m)
        params = (self.target_critic_params if use_target
                  else self.critic_params)
        out = _critic_forward_pallas(x_flat, params, tile_m)
        return out[:, :self.output_dim].astype(jnp.float32)

    def forward_both(self, x):
        """Evaluate critic and target_critic on the same batch in one kernel
        (common CQL training pattern)."""
        x_flat = self._flatten(x)
        B = x_flat.shape[0]
        tile_m = _choose_tile_m(B, self.d_in, 2, self.d_out_pad, self.h_pad,
                                max_tile=self.max_tile_m)
        oc, ot = _dual_critic_forward_pallas(
            x_flat, self._w1_dual, self._b1_dual,
            self.critic_params[2:], self.target_critic_params[2:], tile_m)
        return (oc[:, :self.output_dim].astype(jnp.float32),
                ot[:, :self.output_dim].astype(jnp.float32))


if __name__ == "__main__":
    # Small shapes consistent with the module's defaults (scaled down):
    # seq_len=8, feature_dim=32, embed_dim=128, output_dim=3, batch=1024
    # (batch chosen so the heuristic picks a 512-row tile and a 2-step
    #  "parallel" grid -> exercises pipelining / megacore sharding).
    B, SEQ, FEAT, EMBED, OUT = 1024, 8, 32, 128, 3

    key = jax.random.PRNGKey(0)
    k_params, k_x = jax.random.split(key)

    model = CQLPallas(seq_len=SEQ, feature_dim=FEAT, embed_dim=EMBED,
                      output_dim=OUT, key=k_params)

    x = jax.random.normal(k_x, (B, SEQ, FEAT), dtype=jnp.float32)

    logits = model(x, use_target=False)
    logits_t = model(x, use_target=True)
    both_c, both_t = model.forward_both(x)
    jax.block_until_ready((logits, logits_t, both_c, both_t))

    assert logits.shape == (B, OUT)
    # target critic is an exact copy at init -> identical outputs
    assert bool(jnp.allclose(logits, logits_t))
    # fused two-critic kernel must match the single-critic kernel
    assert bool(jnp.allclose(logits, both_c, atol=1e-2, rtol=1e-2))
    assert bool(jnp.allclose(logits_t, both_t, atol=1e-2, rtol=1e-2))

    # sanity check against a pure-JAX reference mirroring the kernel math
    w1, b1, w2, b2, w3, b3 = model.critic_params
    xf = x.reshape(B, SEQ * FEAT).astype(jnp.bfloat16)
    h = jnp.dot(xf, w1, preferred_element_type=jnp.float32) + b1
    h = jnp.maximum(h, 0.0).astype(jnp.bfloat16)
    h = jnp.dot(h, w2, preferred_element_type=jnp.float32) + b2
    h = jnp.maximum(h, 0.0).astype(jnp.bfloat16)
    ref = (jnp.dot(h, w3, preferred_element_type=jnp.float32) + b3)[:, :OUT]
    assert bool(jnp.allclose(logits, ref, atol=2e-2, rtol=2e-2))

    print("KERNEL_OK")
</pallas_src>

<mosaic_0001>
module attributes {stable_mosaic.version = 11 : i64} {
  func.func @_critic_mlp_kernel(%arg0: i32, %arg1: memref<512x256xbf16, #tpu.memory_space<vmem>>, %arg2: memref<256x128xbf16, #tpu.memory_space<vmem>>, %arg3: memref<1x128xf32, #tpu.memory_space<vmem>>, %arg4: memref<128x128xbf16, #tpu.memory_space<vmem>>, %arg5: memref<1x128xf32, #tpu.memory_space<vmem>>, %arg6: memref<128x128xbf16, #tpu.memory_space<vmem>>, %arg7: memref<1x128xf32, #tpu.memory_space<vmem>>, %arg8: memref<512x128xbf16, #tpu.memory_space<vmem>>) attributes {dimension_semantics = [#tpu.dimension_semantics<parallel>], iteration_bounds = array<i64: 2>, scalar_prefetch = 0 : i64, scratch_operands = 0 : i64, tpu.core_type = #tpu.core_type<tc>, window_params = [{transform_indices = @transform_0, window_bounds = array<i64: 512, 256>}, {pipeline_mode = #tpu.pipeline_mode<synchronous>, transform_indices = @transform_1, window_bounds = array<i64: 256, 128>}, {pipeline_mode = #tpu.pipeline_mode<synchronous>, transform_indices = @transform_2, window_bounds = array<i64: 1, 128>}, {pipeline_mode = #tpu.pipeline_mode<synchronous>, transform_indices = @transform_3, window_bounds = array<i64: 128, 128>}, {pipeline_mode = #tpu.pipeline_mode<synchronous>, transform_indices = @transform_4, window_bounds = array<i64: 1, 128>}, {pipeline_mode = #tpu.pipeline_mode<synchronous>, transform_indices = @transform_5, window_bounds = array<i64: 128, 128>}, {pipeline_mode = #tpu.pipeline_mode<synchronous>, transform_indices = @transform_6, window_bounds = array<i64: 1, 128>}, {transform_indices = @transform_7, window_bounds = array<i64: 512, 128>}]} {
    %c0 = arith.constant 0 : index
    %c0_0 = arith.constant 0 : index
    %0 = vector.load %arg1[%c0, %c0_0] : memref<512x256xbf16, #tpu.memory_space<vmem>>, vector<512x256xbf16>
    %c0_1 = arith.constant 0 : index
    %c0_2 = arith.constant 0 : index
    %1 = vector.load %arg2[%c0_1, %c0_2] : memref<256x128xbf16, #tpu.memory_space<vmem>>, vector<256x128xbf16>
    %cst = arith.constant dense<0.000000e+00> : vector<512x128xf32>
    %2 = tpu.matmul %0, %1, %cst {dimension_numbers = #tpu.dot_dimension_numbers<[1], [0], [0], [1], [0, 0, 1, 1], [], []>} : vector<512x256xbf16>, vector<256x128xbf16>, vector<512x128xf32> -> vector<512x128xf32>
    %c0_3 = arith.constant 0 : index
    %c0_4 = arith.constant 0 : index
    %3 = vector.load %arg3[%c0_3, %c0_4] : memref<1x128xf32, #tpu.memory_space<vmem>>, vector<1x128xf32>
    %4 = vector.broadcast %3 : vector<1x128xf32> to vector<512x128xf32>
    %5 = arith.addf %2, %4 : vector<512x128xf32>
    %cst_5 = arith.constant 0.000000e+00 : f32
    %6 = vector.broadcast %cst_5 : f32 to vector<512x128xf32>
    %7 = arith.maximumf %5, %6 : vector<512x128xf32>
    %8 = arith.truncf %7 : vector<512x128xf32> to vector<512x128xbf16>
    %c0_6 = arith.constant 0 : index
    %c0_7 = arith.constant 0 : index
    %9 = vector.load %arg4[%c0_6, %c0_7] : memref<128x128xbf16, #tpu.memory_space<vmem>>, vector<128x128xbf16>
    %cst_8 = arith.constant dense<0.000000e+00> : vector<512x128xf32>
    %10 = tpu.matmul %8, %9, %cst_8 {dimension_numbers = #tpu.dot_dimension_numbers<[1], [0], [0], [1], [0, 0, 1, 1], [], []>} : vector<512x128xbf16>, vector<128x128xbf16>, vector<512x128xf32> -> vector<512x128xf32>
    %c0_9 = arith.constant 0 : index
    %c0_10 = arith.constant 0 : index
    %11 = vector.load %arg5[%c0_9, %c0_10] : memref<1x128xf32, #tpu.memory_space<vmem>>, vector<1x128xf32>
    %12 = vector.broadcast %11 : vector<1x128xf32> to vector<512x128xf32>
    %13 = arith.addf %10, %12 : vector<512x128xf32>
    %cst_11 = arith.constant 0.000000e+00 : f32
    %14 = vector.broadcast %cst_11 : f32 to vector<512x128xf32>
    %15 = arith.maximumf %13, %14 : vector<512x128xf32>
    %16 = arith.truncf %15 : vector<512x128xf32> to vector<512x128xbf16>
    %c0_12 = arith.constant 0 : index
    %c0_13 = arith.constant 0 : index
    %17 = vector.load %arg6[%c0_12, %c0_13] : memref<128x128xbf16, #tpu.memory_space<vmem>>, vector<128x128xbf16>
    %cst_14 = arith.constant dense<0.000000e+00> : vector<512x128xf32>
    %18 = tpu.matmul %16, %17, %cst_14 {dimension_numbers = #tpu.dot_dimension_numbers<[1], [0], [0], [1], [0, 0, 1, 1], [], []>} : vector<512x128xbf16>, vector<128x128xbf16>, vector<512x128xf32> -> vector<512x128xf32>
    %c0_15 = arith.constant 0 : index
    %c0_16 = arith.constant 0 : index
    %19 = vector.load %arg7[%c0_15, %c0_16] : memref<1x128xf32, #tpu.memory_space<vmem>>, vector<1x128xf32>
    %20 = vector.broadcast %19 : vector<1x128xf32> to vector<512x128xf32>
    %21 = arith.addf %18, %20 : vector<512x128xf32>
    %22 = arith.truncf %21 : vector<512x128xf32> to vector<512x128xbf16>
    %c0_17 = arith.constant 0 : index
    %c0_18 = arith.constant 0 : index
    %23 = vector.load %arg8[%c0_17, %c0_18] : memref<512x128xbf16, #tpu.memory_space<vmem>>, vector<512x128xbf16>
    tpu.vector_store %arg8[%c0_17, %c0_18], %22 {strides = array<i32>} : memref<512x128xbf16, #tpu.memory_space<vmem>>, vector<512x128xbf16>,
    return
  }
  func.func @transform_0(%arg0: i32) -> (i32, i32) {
    %c0_i32 = arith.constant 0 : i32
    %c0_i32_0 = arith.constant 0 : i32
    return %arg0, %c0_i32 : i32, i32
  }
  func.func @transform_1(%arg0: i32) -> (i32, i32) {
    %c0_i32 = arith.constant 0 : i32
    %c0_i32_0 = arith.constant 0 : i32
    %c0_i32_1 = arith.constant 0 : i32
    return %c0_i32, %c0_i32_0 : i32, i32
  }
  func.func @transform_2(%arg0: i32) -> (i32, i32) {
    %c0_i32 = arith.constant 0 : i32
    %c0_i32_0 = arith.constant 0 : i32
    %c0_i32_1 = arith.constant 0 : i32
    return %c0_i32, %c0_i32_0 : i32, i32
  }
  func.func @transform_3(%arg0: i32) -> (i32, i32) {
    %c0_i32 = arith.constant 0 : i32
    %c0_i32_0 = arith.constant 0 : i32
    %c0_i32_1 = arith.constant 0 : i32
    return %c0_i32, %c0_i32_0 : i32, i32
  }
  func.func @transform_4(%arg0: i32) -> (i32, i32) {
    %c0_i32 = arith.constant 0 : i32
    %c0_i32_0 = arith.constant 0 : i32
    %c0_i32_1 = arith.constant 0 : i32
    return %c0_i32, %c0_i32_0 : i32, i32
  }
  func.func @transform_5(%arg0: i32) -> (i32, i32) {
    %c0_i32 = arith.constant 0 : i32
    %c0_i32_0 = arith.constant 0 : i32
    %c0_i32_1 = arith.constant 0 : i32
    return %c0_i32, %c0_i32_0 : i32, i32
  }
  func.func @transform_6(%arg0: i32) -> (i32, i32) {
    %c0_i32 = arith.constant 0 : i32
    %c0_i32_0 = arith.constant 0 : i32
    %c0_i32_1 = arith.constant 0 : i32
    return %c0_i32, %c0_i32_0 : i32, i32
  }
  func.func @transform_7(%arg0: i32) -> (i32, i32) {
    %c0_i32 = arith.constant 0 : i32
    %c0_i32_0 = arith.constant 0 : i32
    return %arg0, %c0_i32 : i32, i32
  }
}

</mosaic_0001>

<bundles_post_ra>
// kernel: tpu_custom_call.1
= control target key start
LH: loop header
LB: loop body
LE: loop exit
PB: predicated region body
PF: predicated region fallthrough
CT: control target
= control target key end

     0   :  { %12 = vsyncpa [#allocation3], 0  ;;  %s4214_s0 = inlined_call_operand.hbm [shape: bf16[1024,256], index: 0, kind: input, shape index: {}]   ;;  %s4215_s1 = inlined_call_operand.hbm [shape: bf16[256,128], index: 1, kind: input, shape index: {}]   ;;  %s4216_s2 = inlined_call_operand.vmem [shape: f32[1,128], index: 2, kind: input, shape index: {}]   ;;  %s4217_s3 = inlined_call_operand.hbm [shape: bf16[128,128], index: 3, kind: input, shape index: {}]   ;;  %s4218_s4 = inlined_call_operand.vmem [shape: f32[1,128], index: 4, kind: input, shape index: {}]   ;;  %s4219_s5 = inlined_call_operand.hbm [shape: bf16[128,128], index: 5, kind: input, shape index: {}]   ;;  %s4220_s6 = inlined_call_operand.vmem [shape: f32[1,128], index: 6, kind: input, shape index: {}]   ;;  %s4221_s7 = inlined_call_operand.hbm [shape: bf16[1024,128], index: 7, kind: output, shape index: {}]  }
   0x1   :  { %14 = vsyncpa [#allocation3 + $0x1], 0 }
   0x2   :  { %15 = vsyncpa [#allocation6], 0 }
   0x3   :  { %16 = vsyncpa [#allocation9], 0 }
   0x4   :  { %17 = vsyncpa [#allocation4], 0 }
   0x5   :  { %19 = vsyncpa [#allocation4 + $0x1], 0  ;;  %s3637_s24 = smov 0   ;;  %s3639_s25 = smov 0  }
   0x6   :  { %s3641_s26 = smov 0   ;;  %s3643_s27 = smov 0  }
   0x7 LB: > { %s3658_s28 = sadd.s32 4294967295, %s3583_s27   ;;  %s2501_s29 = sadd.s32 4294967294, %s3583_s27   ;;  %s3583_s27 = sphi %s3643_s27, %s4247_s27   ;;  %s3579_s26 = sphi %s3641_s26, %s4246_s26   ;;  %s3575_s25 = sphi %s3639_s25, %s4245_s25   ;;  %s3571_s24 = sphi %s3637_s24, %s4244_s24  }
   0x8   : > { %p45_p0 = scmp.ne.s32.totalorder %s3575_s25, %s3571_s24  ;;  %p4222_p1 = scmp.eq.s32.totalorder %s3658_s28, 0 }
   0x9   : > { %p201_p3 = scmp.eq.s32.totalorder %s2501_s29, 1  ;;  %p2502_p5 = scmp.ge.s32.totalorder %s3583_s27, 1 }
   0xa   : > { %p3667_p4 = por %p4222_p1, %p45_p0  ;;  %p208_p7 = scmp.lt.s32.totalorder %s3583_s27, 3 }
   0xb   : > { %p3672_p6 = por %p201_p3, %p45_p0  ;;  %s3585_s10 = smov [#allocation5]  }
   0xc   : > { %s4226_s30 = scalar_select %p3667_p4, 1, 0 }
   0xd   : > { %s4227_s8 = scalar_select %p3672_p6, 1, 0 }
   0xe   : > { %p3677_p8 = pnand %p2502_p5, %p208_p7  ;;  %s220_s11 = sshll.u32 %s3585_s10, 4  ;;  %s3681_s11 = int_to_ptr.vmem [resolvable:$true] %s220_s11 }
   0xf   : > { %4228 = sst [smem:[#allocation15_spill]] %s4227_s8  ;;  %s3586_s13 = smov [#allocation7]  }
  0x10   : > { %s4229_s9 = scalar_select %p3677_p8, 1, 0 }
  0x11   : > { %p3199_p9 = pneg %p3677_p8  ;;  %s236_s14 = sshll.u32 %s3586_s13, 4  ;;  %s3692_s14 = int_to_ptr.vmem [resolvable:$true] %s236_s14 }
  0x12   : > { %s3587_s15 = smov [#allocation8]   ;;  %s3395_s19 = scalar_lea.hbm %s4215_s1, 2048 }
  0x13   : > { %p3688_p11 = pnand %p3199_p9, %p4222_p1  ;;  %s3694_s16 = sshll.u32 %s3587_s15, 4  ;;  %s253_s16 = int_to_ptr.vmem [resolvable:$true] %s3694_s16 }
  0x14   : > { %p3396_p12 = scmp.ne.s32.totalorder %s4215_s1, %s3395_s19  ;;  %p3402_p5 = scmp.lt.u32.totalorder %s3395_s19, %s4215_s1 }
  0x15   : > { %p3704_p13 = pneg %p3688_p11 }
  0x17   : > { %p3398_p0 = pnand %p3704_p13, %p3396_p12 }
  0x19   : > { %p3399_p3 = pneg %p3398_p0 }
  0x1b   : > { %p3404_p7 = pnand %p3402_p5, %p3399_p3 }
  0x1d   : > { %3407 = shalt.err (!%p3404_p7)
}
  0x1e   : > { %s3408_s10 = scalar_lea.vmem %s3681_s11, 2048  ;;  %p3416_p2 = scmp.lt.s32.totalorder %s3681_s11, %s3681_s11 }
  0x1f   : > { %p3409_p9 = scmp.ne.s32.totalorder %s3681_s11, %s3408_s10  ;;  %p3417_p6 = scmp.lt.s32.totalorder %s3408_s10, %s3408_s10 }
  0x21   : > { %p3411_p10 = pnand %p3409_p9, %p3704_p13  ;;  %p3418_p12 = por %p3417_p6, %p3416_p2 }
  0x23   : > { %p3412_p1 = pneg %p3411_p10 }
  0x25   : > { %p3419_p0 = pnand %p3418_p12, %p3412_p1 }
  0x27   : > { %3422 = shalt.err (!%p3419_p0)
}
  0x28   : > { %s3588_s13 = smov 64   ;;  %s3589_s15 = smov 4  }
  0x29   : > { %3202 = dma.hbm_to_vmem [thread:$0]  (!%p3688_p11), %s4215_s1, 2048, %s3681_s11, [#allocation6], %s3588_s13, %s3588_s13, %s3589_s15  }
  0x2a   : > { %s3423_s21 = scalar_lea.hbm %s4217_s3, 1024 }
  0x2b   : > { %p3424_p1 = scmp.ne.s32.totalorder %s4217_s3, %s3423_s21  ;;  %p3430_p10 = scmp.lt.u32.totalorder %s3423_s21, %s4217_s3 }
  0x2d   : > { %p3426_p2 = pnand %p3424_p1, %p3704_p13 }
  0x2f   : > { %p3427_p6 = pneg %p3426_p2 }
  0x31   : > { %p3432_p3 = pnand %p3430_p10, %p3427_p6 }
  0x33   : > { %3435 = shalt.err (!%p3432_p3)
}
  0x34   : > { %s3436_s11 = scalar_lea.vmem %s3692_s14, 1024  ;;  %p3444_p12 = scmp.lt.s32.totalorder %s3692_s14, %s3692_s14 }
  0x35   : > { %p3437_p5 = scmp.ne.s32.totalorder %s3692_s14, %s3436_s11  ;;  %p3445_p0 = scmp.lt.s32.totalorder %s3436_s11, %s3436_s11 }
  0x37   : > { %p3439_p7 = pnand %p3437_p5, %p3704_p13  ;;  %p3446_p1 = por %p3445_p0, %p3444_p12 }
  0x39   : > { %p3440_p9 = pneg %p3439_p7 }
  0x3b   : > { %p3447_p2 = pnand %p3446_p1, %p3440_p9 }
  0x3d   : > { %3450 = shalt.err (!%p3447_p2)
}
  0x3e   : > { %3205 = dma.hbm_to_vmem [thread:$0]  (!%p3688_p11), %s4217_s3, 1024, %s3692_s14, [#allocation6], %s3588_s13, %s3588_s13, %s3589_s15  }
  0x3f   : > { %s3451_s20 = scalar_lea.hbm %s4219_s5, 1024 }
  0x40   : > { %p3452_p6 = scmp.ne.s32.totalorder %s4219_s5, %s3451_s20  ;;  %p3458_p5 = scmp.lt.u32.totalorder %s3451_s20, %s4219_s5 }
  0x42   : > { %p3454_p10 = pnand %p3452_p6, %p3704_p13 }
  0x44   : > { %p3455_p3 = pneg %p3454_p10 }
  0x46   : > { %p3460_p7 = pnand %p3458_p5, %p3455_p3 }
  0x48   : > { %3463 = shalt.err (!%p3460_p7)
}
  0x49   : > { %s3464_s11 = scalar_lea.vmem %s253_s16, 1024  ;;  %p3472_p1 = scmp.lt.s32.totalorder %s253_s16, %s253_s16 }
  0x4a   : > { %p3465_p9 = scmp.ne.s32.totalorder %s253_s16, %s3464_s11  ;;  %p3473_p2 = scmp.lt.s32.totalorder %s3464_s11, %s3464_s11 }
  0x4c   : > { %p3467_p12 = pnand %p3465_p9, %p3704_p13  ;;  %p3474_p4 = por %p3473_p2, %p3472_p1 }
  0x4e   : > { %p3468_p0 = pneg %p3467_p12 }
  0x50   : > { %p3475_p8 = pnand %p3474_p4, %p3468_p0 }
  0x52   : > { %3478 = shalt.err (!%p3475_p8)
}
  0x53   : > { %3208 = dma.hbm_to_vmem [thread:$0]  (!%p3688_p11), %s4219_s5, 1024, %s253_s16, [#allocation9], %s3588_s13, %s3588_s13, %s3589_s15  }
  0x54   : > { %s3777_s22 = sadd.s32 1, %s3583_s27   ;;  %s32_s17 = sadd.s32 1, %s3579_s26 }
  0x55   : > { %s29_s12 = ssub.s32 %s3583_s27, %s3777_s22  ;;  %p39_p8 = scmp.ne.s32.totalorder %s3579_s26, %s3575_s25 }
  0x56   : > { %p30_p4 = scmp.eq.s32.totalorder %s29_s12, 0  ;;  %p40_p13 = scmp.eq.s32.totalorder %s3583_s27, 0 }
  0x57   : > { %p3220_p6 = scmp.lt.s32.totalorder %s3583_s27, 2  ;;  %p4232_p3 = scmp.eq.s32.totalorder %s3658_s28, 1 }
  0x58   : > { %s3787_s18 = scalar_select %p30_p4, %s3579_s26, %s32_s17  }
  0x59   : > { %p41_p10 = por %p40_p13, %p39_p8  ;;  %p3791_p5 = por %p4232_p3, %p39_p8 }
  0x5a   : > { %s269_s20 = sand.u32 1, %s3579_s26   ;;  %s2686_s21 = sshll.u32 %s3583_s27, 13 }
  0x5b   : > { %s2507_s16 = sshll.u32 %s269_s20, 9  ;;  %s3800_s23 = scalar_lea.hbm %s4214_s0, %s2686_s21 }
  0x5c   : > { %s273_s29 = scalar_lea.vmem [#allocation2], %s2507_s16  ;;  %p3802_p11 = pnand %p3220_p6, %p41_p10 }
  0x5d   : > { %s281_s10 = sshll.u32 %s273_s29, 4  ;;  %s3808_s14 = scalar_lea.sflag [#allocation3], %s269_s20  ;;  %s3806_s10 = int_to_ptr.vmem [resolvable:$true] %s281_s10 }
  0x5e   : > { %s3479_s8 = scalar_lea.hbm %s3800_s23, 8192  ;;  %p3481_p9 = pneg %p3802_p11 }
  0x5f   : > { %p3480_p7 = scmp.ne.s32.totalorder %s3800_s23, %s3479_s8  ;;  %s3484_s21 = scalar_lea.hbm %s4214_s0, 16384 }
  0x60   : > { %p3485_p1 = scmp.lt.u32.totalorder %s3800_s23, %s4214_s0  ;;  %p3486_p2 = scmp.lt.u32.totalorder %s3484_s21, %s3479_s8 }
  0x61   : > { %p3482_p12 = pnand %p3481_p9, %p3480_p7  ;;  %p3488_p8 = scmp.lt.u32.totalorder %s3479_s8, %s3800_s23 }
  0x62   : > { %p3487_p4 = por %p3486_p2, %p3485_p1 }
  0x63   : > { %p3483_p0 = pneg %p3482_p12 }
  0x64   : > { %p3489_p13 = por %p3488_p8, %p3487_p4 }
  0x66   : > { %p3490_p6 = pnand %p3489_p13, %p3483_p0 }
  0x68   : > { %3493 = shalt.err (!%p3490_p6)
}
  0x69   : > { %s3494_s20 = scalar_lea.vmem %s3806_s10, 8192  ;;  %s3590_s15 = smov [#allocation2]  }
  0x6a   : > { %p3495_p10 = scmp.ne.s32.totalorder %s3806_s10, %s3494_s20  ;;  %s3499_s29 = sshll.u32 %s3590_s15, 4  ;;  %s3500_s29 = int_to_ptr.vmem [resolvable:$false] %s3499_s29 }
  0x6b   : > { %s3501_s12 = scalar_lea.vmem %s3500_s29, 16384  ;;  %p3502_p12 = scmp.lt.s32.totalorder %s3806_s10, %s3500_s29 }
  0x6c   : > { %p3497_p3 = pnand %p3495_p10, %p3481_p9  ;;  %p3503_p1 = scmp.lt.s32.totalorder %s3501_s12, %s3494_s20 }
  0x6e   : > { %p3498_p7 = pneg %p3497_p3  ;;  %p3504_p2 = por %p3503_p1, %p3502_p12 }
  0x70   : > { %p3505_p4 = pnand %p3504_p2, %p3498_p7 }
  0x72   : > { %3508 = shalt.err (!%p3505_p4)
}
  0x73   : > { %s3591_s8 = smov 128   ;;  %s3592_s17 = smov 8  }
  0x74   : > { %3212 = dma.hbm_to_vmem [thread:$0]  (!%p3802_p11), %s3800_s23, 8192, %s3806_s10, %s3808_s14, %s3591_s8, %s3591_s8, %s3592_s17  }
  0x75   : > { %p4235_p9 = scmp.ne.s32.totalorder %s4229_s9, 0 }
  0x76   : > { %s3839_s21 = sand.u32 (!%p4235_p9), 1, %s3575_s25   ;;  %p4236_p0 = scmp.ne.s32.totalorder (!%p4235_p9), %s4226_s30, 0 }
  0x77   : > { %293 = sbr.rel (%p4235_p9) target bundleno = 1123 (0x463), region = 48  ;;  %s2512_s16 = sshll.u32 (!%p4235_p9), %s3839_s21, 9 }
  0x78   : > { %s296_s13 = scalar_lea.sflag (!%p4235_p9), [#allocation3], %s3839_s21  ;;  %s3843_s20 = scalar_lea.vmem (!%p4235_p9), [#allocation2], %s2512_s16 }
  0x7e   : > { %3554 = dma.done.wait (%p4236_p0), %s296_s13, 8192  }
  0x7f   : > { %3556 = vsyncadd (%p4236_p0), %s296_s13, 4294959104  ;;  %p4237_p11 = scmp.eq.s32.totalorder %s3658_s28, 0 }
  0x81   : > { %3558 = dma.done.wait (%p4237_p11), [#allocation6], 3072   ;;  %p4238_p8 = pmov %p4237_p11 }
  0x83   : > { %3560 = vsyncadd (%p4238_p8), [#allocation6], 4294964224  ;;  %p4239_p13 = pmov %p4238_p8 }
  0x84   : > { %p4240_p6 = pmov %p4238_p8 }
  0x85   : > { %3562 = dma.done.wait (%p4239_p13), [#allocation9], 1024  }
  0x86   : > { %3564 = vsyncadd (%p4240_p6), [#allocation9], 4294966272  ;;  %v3593_v0 = vmov 0   ;;  %v3267_v1 = vld [vmem:[#allocation5] sm:$0xff]   ;;  %v3268_v2 = vld [vmem:[#allocation5 + $0x8] sm:$0xff]   ;;  %s2516_s15 = sshll.u32 %s3839_s21, 8 }
  0x87   : > { %864 = vmatprep.subr.bf16.mxu0 %v3593_v0  ;;  %v3269_v3 = vld [vmem:[#allocation5 + $0x10] sm:$0xff]   ;;  %v3270_v4 = vld [vmem:[#allocation5 + $0x18] sm:$0xff]   ;;  %v3271_v5 = vld [vmem:[#allocation5 + $0x20] sm:$0xff]   ;;  %s4069_s29 = scalar_lea.vmem [#allocation10], %s2516_s15  ;;  %s2751_s12 = sshll.u32 %s3658_s28, 12 }
  0x88   : > { %865 = vmatpush1.bf16.msra.mxu0 %v3267_v1  ;;  %v3285_v6 = vld [vmem:[%s3843_s20 + $0x4] ss:$8 sps:$4 sm:$0xff]   ;;  %v3273_v8 = vld [vmem:[#allocation5 + $0x30] sm:$0xff]   ;;  %v3274_v9 = vld [vmem:[#allocation5 + $0x38] sm:$0xff]   ;;  %s2399_s8 = sshll.u32 %s4069_s29, 4  ;;  %s4166_s13 = scalar_lea.hbm %s4221_s7, %s2751_s12  ;;  %s4168_s8 = int_to_ptr.vmem [resolvable:$true] %s2399_s8 }
  0x89   : > { %866 = vmatprep.subr.bf16.mxu0 %v3593_v0  ;;  %v3272_v7 = vld [vmem:[#allocation5 + $0x28] sm:$0xff]   ;;  %896 = vmatprep.mubr.bf16.mxu0 %v3285_v6  ;;  %v3275_v10 = vld [vmem:[#allocation5 + $0x40] sm:$0xff]   ;;  %v3277_v12 = vld [vmem:[#allocation5 + $0x50] sm:$0xff]   ;;  %s2386_s28 = scalar_lea.sflag [#allocation4], %s3839_s21  ;;  %s3594_s30 = smov [#allocation10]  }
  0x8a   : > { %v3276_v11 = vld [vmem:[#allocation5 + $0x48] sm:$0xff]   ;;  %v3278_v13 = vld [vmem:[#allocation5 + $0x58] sm:$0xff]   ;;  %v3279_v14 = vld [vmem:[#allocation5 + $0x60] sm:$0xff]   ;;  %s3513_s9 = sshll.u32 %s3594_s30, 4  ;;  %s3514_s9 = int_to_ptr.vmem [resolvable:$false] %s3513_s9 }
  0x8b   : > { %v3280_v15 = vld [vmem:[#allocation5 + $0x68] sm:$0xff]   ;;  %v3281_v16 = vld [vmem:[#allocation5 + $0x70] sm:$0xff]   ;;  %v3282_v17 = vld [vmem:[#allocation5 + $0x78] sm:$0xff]   ;;  %s3515_s23 = scalar_lea.vmem %s3514_s9, 8192  ;;  %p3516_p12 = scmp.lt.s32.totalorder %s4168_s8, %s3514_s9 }
  0x8c   : > { %867 = vmatpush1.bf16.msra.mxu0 %v3268_v2  ;;  %v3283_v18 = vld [vmem:[%s3843_s20] ss:$8 sps:$4 sm:$0xff]   ;;  %v3286_v19 = vld [vmem:[%s3843_s20 + $0x14] ss:$8 sps:$4 sm:$0xff]   ;;  %v3288_v20 = vld [vmem:[%s3843_s20 + $0x10] ss:$8 sps:$4 sm:$0xff]  }
  0x8d   : > { %868 = vmatprep.subr.bf16.mxu0 %v3593_v0  ;;  %v3289_v21 = vld [vmem:[%s3843_s20 + $0x24] ss:$8 sps:$4 sm:$0xff]   ;;  %v3291_v22 = vld [vmem:[%s3843_s20 + $0x20] ss:$8 sps:$4 sm:$0xff]   ;;  %v3292_v23 = vld [vmem:[%s3843_s20 + $0x34] ss:$8 sps:$4 sm:$0xff]  }
  0x8e   : > { %v3294_v24 = vld [vmem:[%s3843_s20 + $0x30] ss:$8 sps:$4 sm:$0xff]   ;;  %v3295_v25 = vld [vmem:[%s3843_s20 + $0x44] ss:$8 sps:$4 sm:$0xff]   ;;  %v3297_v26 = vld [vmem:[%s3843_s20 + $0x40] ss:$8 sps:$4 sm:$0xff]  }
  0x8f   : > { %v3298_v27 = vld [vmem:[%s3843_s20 + $0x54] ss:$8 sps:$4 sm:$0xff]   ;;  %v3300_v28 = vld [vmem:[%s3843_s20 + $0x50] ss:$8 sps:$4 sm:$0xff]   ;;  %v3301_v29 = vld [vmem:[%s3843_s20 + $0x64] ss:$8 sps:$4 sm:$0xff]  }
  0x90   : > { %869 = vmatpush1.bf16.msra.mxu0 %v3269_v3  ;;  %v3303_v30 = vld [vmem:[%s3843_s20 + $0x60] ss:$8 sps:$4 sm:$0xff]   ;;  %v3304_v31 = vld [vmem:[%s3843_s20 + $0x74] ss:$8 sps:$4 sm:$0xff]   ;;  %v3306_v32 = vld [vmem:[%s3843_s20 + $0x70] ss:$8 sps:$4 sm:$0xff]  }
  0x91   : > { %870 = vmatprep.subr.bf16.mxu0 %v3593_v0  ;;  %v3307_v33 = vld [vmem:[%s3843_s20 + $0x84] ss:$8 sps:$4 sm:$0xff]   ;;  %v3309_v34 = vld [vmem:[%s3843_s20 + $0x80] ss:$8 sps:$4 sm:$0xff]   ;;  %v3310_v35 = vld [vmem:[%s3843_s20 + $0x94] ss:$8 sps:$4 sm:$0xff]  }
  0x92   : > { %v3358_v36 = vld [vmem:[#allocation7] sm:$0xff]   ;;  %v3312_v37 = vld [vmem:[%s3843_s20 + $0x90] ss:$8 sps:$4 sm:$0xff]   ;;  %v3362_v39 = vld [vmem:[#allocation7 + $0x8] sm:$0xff]  }
  0x93   : > { %3023 = vmatprep.subr.bf16.mxu1 %v3358_v36  ;;  %v3313_v38 = vld [vmem:[%s3843_s20 + $0xa4] ss:$8 sps:$4 sm:$0xff]   ;;  %v3363_v40 = vld [vmem:[#allocation7 + $0x10] sm:$0xff]   ;;  %v3315_v41 = vld [vmem:[%s3843_s20 + $0xa0] ss:$8 sps:$4 sm:$0xff]  }
  0x94   : > { %871 = vmatpush1.bf16.msra.mxu0 %v3270_v4  ;;  %3024 = vmatpush3.bf16.msra.mxu1 %v3358_v36  ;;  %v3316_v42 = vld [vmem:[%s3843_s20 + $0xb4] ss:$8 sps:$4 sm:$0xff]   ;;  %v3368_v44 = vld [vmem:[#allocation7 + $0x20] sm:$0xff]   ;;  %v3318_v45 = vld [vmem:[%s3843_s20 + $0xb0] ss:$8 sps:$4 sm:$0xff]  }
  0x95   : > { %872 = vmatprep.subr.bf16.mxu0 %v3593_v0  ;;  %3025 = vmatprep.subr.bf16.mxu1 %v3362_v39  ;;  %v3367_v43 = vld [vmem:[#allocation7 + $0x18] sm:$0xff]   ;;  %v3319_v46 = vld [vmem:[%s3843_s20 + $0xc4] ss:$8 sps:$4 sm:$0xff]   ;;  %v3373_v48 = vld [vmem:[#allocation7 + $0x30] sm:$0xff]  }
  0x96   : > { %v3372_v47 = vld [vmem:[#allocation7 + $0x28] sm:$0xff]   ;;  %v3322_v50 = vld [vmem:[%s3843_s20 + $0xd4] ss:$8 sps:$4 sm:$0xff]   ;;  %v3324_v52 = vld [vmem:[%s3843_s20 + $0xd0] ss:$8 sps:$4 sm:$0xff]  }
  0x97   : > { %v3321_v49 = vld [vmem:[%s3843_s20 + $0xc0] ss:$8 sps:$4 sm:$0xff]   ;;  %v3377_v51 = vld [vmem:[#allocation7 + $0x38] sm:$0xff]   ;;  %v3325_v53 = vld [vmem:[%s3843_s20 + $0xe4] ss:$8 sps:$4 sm:$0xff]  }
  0x98   : > { %873 = vmatpush1.bf16.msra.mxu0 %v3271_v5  ;;  %3026 = vmatpush3.bf16.msra.mxu1 %v3362_v39  ;;  %v3327_v54 = vld [vmem:[%s3843_s20 + $0xe0] ss:$8 sps:$4 sm:$0xff]   ;;  %v3328_v55 = vld [vmem:[%s3843_s20 + $0xf4] ss:$8 sps:$4 sm:$0xff]   ;;  %v3330_v56 = vld [vmem:[%s3843_s20 + $0xf0] ss:$8 sps:$4 sm:$0xff]  }
  0x99   : > { %874 = vmatprep.subr.bf16.mxu0 %v3593_v0  ;;  %3027 = vmatprep.subr.bf16.mxu1 %v3363_v40  ;;  %v3331_v57 = vld [vmem:[%s3843_s20 + $0x104] ss:$8 sps:$4 sm:$0xff]   ;;  %v3333_v58 = vld [vmem:[%s3843_s20 + $0x100] ss:$8 sps:$4 sm:$0xff]   ;;  %v3334_v59 = vld [vmem:[%s3843_s20 + $0x114] ss:$8 sps:$4 sm:$0xff]  }
  0x9a   : > { %v3336_v60 = vld [vmem:[%s3843_s20 + $0x110] ss:$8 sps:$4 sm:$0xff]   ;;  %v3337_v61 = vld [vmem:[%s3843_s20 + $0x124] ss:$8 sps:$4 sm:$0xff]   ;;  %v3339_v62 = vld [vmem:[%s3843_s20 + $0x120] ss:$8 sps:$4 sm:$0xff]  }
  0x9b   : > { %v3340_v63 = vld [vmem:[%s3843_s20 + $0x134] ss:$8 sps:$4 sm:$0xff]   ;;  %v3343_v1 = vld [vmem:[%s3843_s20 + $0x144] ss:$8 sps:$4 sm:$0xff]   ;;  %v3345_v2 = vld [vmem:[%s3843_s20 + $0x140] ss:$8 sps:$4 sm:$0xff]  }
  0x9c   : > { %875 = vmatpush1.bf16.msra.mxu0 %v3272_v7  ;;  %3028 = vmatpush3.bf16.msra.mxu1 %v3363_v40  ;;  %v3346_v3 = vld [vmem:[%s3843_s20 + $0x154] ss:$8 sps:$4 sm:$0xff]   ;;  %v3348_v4 = vld [vmem:[%s3843_s20 + $0x150] ss:$8 sps:$4 sm:$0xff]   ;;  %v3349_v5 = vld [vmem:[%s3843_s20 + $0x164] ss:$8 sps:$4 sm:$0xff]  }
  0x9d   : > { %876 = vmatprep.subr.bf16.mxu0 %v3593_v0  ;;  %3029 = vmatprep.subr.bf16.mxu1 %v3367_v43  ;;  %v3351_v6 = vld [vmem:[%s3843_s20 + $0x160] ss:$8 sps:$4 sm:$0xff]   ;;  %v3352_v7 = vld [vmem:[%s3843_s20 + $0x174] ss:$8 sps:$4 sm:$0xff]  }
  0xa0   : > { %877 = vmatpush1.bf16.msra.mxu0 %v3273_v8  ;;  %3030 = vmatpush3.bf16.msra.mxu1 %v3367_v43  ;;  %v3354_v8 = vld [vmem:[%s3843_s20 + $0x170] ss:$8 sps:$4 sm:$0xff]  }
  0xa1   : > { %878 = vmatprep.subr.bf16.mxu0 %v3593_v0  ;;  %3031 = vmatprep.subr.bf16.mxu1 %v3368_v44 }
  0xa4   : > { %879 = vmatpush1.bf16.msra.mxu0 %v3274_v9  ;;  %3032 = vmatpush3.bf16.msra.mxu1 %v3368_v44  ;;  %v3355_v9 = vld [vmem:[%s3843_s20 + $0x184] ss:$8 sps:$4 sm:$0xff]  }
  0xa5   : > { %880 = vmatprep.subr.bf16.mxu0 %v3593_v0  ;;  %3033 = vmatprep.subr.bf16.mxu1 %v3372_v47  ;;  %v3381_v44 = vld [vmem:[%s3843_s20 + $0x1e4] ss:$8 sps:$4 sm:$0xff]  }
  0xa8   : > { %881 = vmatpush1.bf16.msra.mxu0 %v3275_v10  ;;  %3034 = vmatpush3.bf16.msra.mxu1 %v3372_v47  ;;  %v3357_v10 = vld [vmem:[%s3843_s20 + $0x180] ss:$8 sps:$4 sm:$0xff]  }
  0xa9   : > { %882 = vmatprep.subr.bf16.mxu0 %v3593_v0  ;;  %3035 = vmatprep.subr.bf16.mxu1 %v3373_v48 }
  0xac   : > { %883 = vmatpush1.bf16.msra.mxu0 %v3276_v11  ;;  %3036 = vmatpush3.bf16.msra.mxu1 %v3373_v48  ;;  %v3359_v11 = vld [vmem:[%s3843_s20 + $0x194] ss:$8 sps:$4 sm:$0xff]  }
  0xad   : > { %884 = vmatprep.subr.bf16.mxu0 %v3593_v0  ;;  %3037 = vmatprep.subr.bf16.mxu1 %v3377_v51 }
  0xb0   : > { %885 = vmatpush1.bf16.msra.mxu0 %v3277_v12  ;;  %3038 = vmatpush3.bf16.msra.mxu1 %v3377_v51  ;;  %v3361_v12 = vld [vmem:[%s3843_s20 + $0x190] ss:$8 sps:$4 sm:$0xff]  }
  0xb1   : > { %886 = vmatprep.subr.bf16.mxu0 %v3593_v0 }
  0xb4   : > { %887 = vmatpush1.bf16.msra.mxu0 %v3278_v13  ;;  %v3364_v13 = vld [vmem:[%s3843_s20 + $0x1a4] ss:$8 sps:$4 sm:$0xff]  }
  0xb5   : > { %888 = vmatprep.subr.bf16.mxu0 %v3593_v0 }
  0xb8   : > { %889 = vmatpush1.bf16.msra.mxu0 %v3279_v14  ;;  %v3366_v14 = vld [vmem:[%s3843_s20 + $0x1a0] ss:$8 sps:$4 sm:$0xff]  }
  0xb9   : > { %890 = vmatprep.subr.bf16.mxu0 %v3593_v0 }
  0xbc   : > { %891 = vmatpush1.bf16.msra.mxu0 %v3280_v15  ;;  %v3369_v15 = vld [vmem:[%s3843_s20 + $0x1b4] ss:$8 sps:$4 sm:$0xff]  }
  0xbd   : > { %892 = vmatprep.subr.bf16.mxu0 %v3593_v0 }
  0xc0   : > { %893 = vmatpush1.bf16.msra.mxu0 %v3281_v16  ;;  %v3915_v16 = vld [vmem:[%s4216_s2] ss:$0 sm:$0xff] }
  0xc1   : > { %894 = vmatprep.subr.bf16.mxu0 %v3593_v0  ;;  %v3342_v0 = vld [vmem:[%s3843_s20 + $0x130] ss:$8 sps:$4 sm:$0xff]  }
  0xc4   : > { %895 = vmatpush1.bf16.msra.mxu0 %v3282_v17 }
  0xc7   : > { %897 = vmatmul.mubr.bf16.vlgmr.msra.gmra.mrb[0].mxu0 %v3283_v18 }
  0xc8   : > { %904 = vmatprep.mubr.bf16.mxu0 %v3286_v19 }
  0xcf   : > { %905 = vmatmul.mubr.bf16.gmra.mrb[4].mxu0 %v3288_v20  ;;  %v3371_v20 = vld [vmem:[%s3843_s20 + $0x1b0] ss:$8 sps:$4 sm:$0xff]  }
  0xd0   : > { %912 = vmatprep.mubr.bf16.mxu0 %v3289_v21 }
  0xd7   : > { %913 = vmatmul.mubr.bf16.gmra.mrb[8].mxu0 %v3291_v22  ;;  %v3374_v22 = vld [vmem:[%s3843_s20 + $0x1c4] ss:$8 sps:$4 sm:$0xff]  }
  0xd8   : > { %920 = vmatprep.mubr.bf16.mxu0 %v3292_v23 }
  0xdf   : > { %921 = vmatmul.mubr.bf16.gmra.mrb[12].mxu0 %v3294_v24 }
  0xe0   : > { %928 = vmatprep.mubr.bf16.mxu0 %v3295_v25 }
  0xe7   : > { %929 = vmatmul.mubr.bf16.gmra.mrb[16].mxu0 %v3297_v26 }
  0xe8   : > { %936 = vmatprep.mubr.bf16.mxu0 %v3298_v27 }
  0xef   : > { %937 = vmatmul.mubr.bf16.gmra.mrb[20].mxu0 %v3300_v28 }
  0xf0   : > { %944 = vmatprep.mubr.bf16.mxu0 %v3301_v29 }
  0xf7   : > { %945 = vmatmul.mubr.bf16.gmra.mrb[24].mxu0 %v3303_v30 }
  0xf8   : > { %952 = vmatprep.mubr.bf16.mxu0 %v3304_v31  ;;  %v3376_v31 = vld [vmem:[%s3843_s20 + $0x1c0] ss:$8 sps:$4 sm:$0xff]  }
  0xff   : > { %953 = vmatmul.mubr.bf16.gmra.mrb[28].mxu0 %v3306_v32 }
 0x100   : > { %960 = vmatprep.mubr.bf16.mxu0 %v3307_v33  ;;  %v3378_v33 = vld [vmem:[%s3843_s20 + $0x1d4] ss:$8 sps:$4 sm:$0xff]  }
 0x107   : > { %961 = vmatmul.mubr.bf16.gmra.mrb[32].mxu0 %v3309_v34 }
 0x108   : > { %968 = vmatprep.mubr.bf16.mxu0 %v3310_v35 }
 0x10f   : > { %969 = vmatmul.mubr.bf16.gmra.mrb[36].mxu0 %v3312_v37 }
 0x110   : > { %976 = vmatprep.mubr.bf16.mxu0 %v3313_v38 }
 0x117   : > { %977 = vmatmul.mubr.bf16.gmra.mrb[40].mxu0 %v3315_v41 }
 0x118   : > { %984 = vmatprep.mubr.bf16.mxu0 %v3316_v42  ;;  %v3380_v42 = vld [vmem:[%s3843_s20 + $0x1d0] ss:$8 sps:$4 sm:$0xff]  }
 0x11f   : > { %985 = vmatmul.mubr.bf16.gmra.mrb[44].mxu0 %v3318_v45 }
 0x120   : > { %992 = vmatprep.mubr.bf16.mxu0 %v3319_v46 }
 0x127   : > { %993 = vmatmul.mubr.bf16.gmra.mrb[48].mxu0 %v3321_v49 }
 0x128   : > { %1000 = vmatprep.mubr.bf16.mxu0 %v3322_v50 }
 0x12f   : > { %1001 = vmatmul.mubr.bf16.gmra.mrb[52].mxu0 %v3324_v52 }
 0x130   : > { %1008 = vmatprep.mubr.bf16.mxu0 %v3325_v53  ;;  %v3383_v53 = vld [vmem:[%s3843_s20 + $0x1e0] ss:$8 sps:$4 sm:$0xff]  }
 0x137   : > { %1009 = vmatmul.mubr.bf16.gmra.mrb[56].mxu0 %v3327_v54 }
 0x138   : > { %1016 = vmatprep.mubr.bf16.mxu0 %v3328_v55  ;;  %v3384_v55 = vld [vmem:[%s3843_s20 + $0x1f4] ss:$8 sps:$4 sm:$0xff]  }
 0x13f   : > { %1017 = vmatmul.mubr.bf16.gmra.mrb[60].mxu0 %v3330_v56 }
 0x140   : > { %1024 = vmatprep.mubr.bf16.mxu0 %v3331_v57 }
 0x147   : > { %1025 = vmatmul.mubr.bf16.gmra.mrb[64].mxu0 %v3333_v58 }
 0x148   : > { %1032 = vmatprep.mubr.bf16.mxu0 %v3334_v59 }
 0x14f   : > { %1033 = vmatmul.mubr.bf16.gmra.mrb[68].mxu0 %v3336_v60 }
 0x150   : > { %1040 = vmatprep.mubr.bf16.mxu0 %v3337_v61 }
 0x157   : > { %1041 = vmatmul.mubr.bf16.gmra.mrb[72].mxu0 %v3339_v62 }
 0x158   : > { %1048 = vmatprep.mubr.bf16.mxu0 %v3340_v63 }
 0x15f   : > { %1049 = vmatmul.mubr.bf16.gmra.mrb[76].mxu0 %v3342_v0  ;;  %v3386_v0 = vld [vmem:[%s3843_s20 + $0x1f0] ss:$8 sps:$4 sm:$0xff]   ;;  %s3509_s20 = scalar_lea.vmem %s4168_s8, 4096 }
 0x160   : > { %1056 = vmatprep.mubr.bf16.mxu0 %v3343_v1  ;;  %p3510_p10 = scmp.ne.s32.totalorder %s4168_s8, %s3509_s20  ;;  %p3517_p1 = scmp.lt.s32.totalorder %s3515_s23, %s3509_s20 }
 0x162   : > { %p3511_p3 = pnand %p3510_p10, %p3791_p5  ;;  %p3518_p2 = por %p3517_p1, %p3516_p12 }
 0x164   : > { %p3512_p7 = pneg %p3511_p3 }
 0x166   : > { %p3519_p4 = pnand %p3518_p2, %p3512_p7 }
 0x167   : > { %1057 = vmatmul.mubr.bf16.gmra.mrb[80].mxu0 %v3345_v2 }
 0x168   : > { %1064 = vmatprep.mubr.bf16.mxu0 %v3346_v3 }
 0x16f   : > { %1065 = vmatmul.mubr.bf16.gmra.mrb[84].mxu0 %v3348_v4 }
 0x170   : > { %1072 = vmatprep.mubr.bf16.mxu0 %v3349_v5 }
 0x177   : > { %1073 = vmatmul.mubr.bf16.gmra.mrb[88].mxu0 %v3351_v6 }
 0x178   : > { %1080 = vmatprep.mubr.bf16.mxu0 %v3352_v7 }
 0x17f   : > { %1081 = vmatmul.mubr.bf16.gmra.mrb[92].mxu0 %v3354_v8 }
 0x180   : > { %1088 = vmatprep.mubr.bf16.mxu0 %v3355_v9 }
 0x187   : > { %1089 = vmatmul.mubr.bf16.gmra.mrb[96].mxu0 %v3357_v10 }
 0x188   : > { %1096 = vmatprep.mubr.bf16.mxu0 %v3359_v11 }
 0x18f   : > { %1097 = vmatmul.mubr.bf16.gmra.mrb[100].mxu0 %v3361_v12 }
 0x190   : > { %1104 = vmatprep.mubr.bf16.mxu0 %v3364_v13 }
 0x197   : > { %1105 = vmatmul.mubr.bf16.gmra.mrb[104].mxu0 %v3366_v14 }
 0x198   : > { %1112 = vmatprep.mubr.bf16.mxu0 %v3369_v15 }
 0x19a   : > { %v898_v17 = vpop.f32.mrb[0].mxu0 }
 0x19b   : > { %v899_v18 = vadd.f32 %v3915_v16, %v898_v17  ;;  %v900_v19 = vpop.f32.mrb[1].mxu0 }
 0x19c   : > { %v901_v21 = vpop.f32.mrb[2].mxu0 }
 0x19d   : > { %v902_v23 = vadd.f32 %v3915_v16, %v901_v21  ;;  %v903_v24 = vpop.f32.mrb[3].mxu0  ;;  %v1153_v25 = vmax.f32 %v899_v18, 0.0 }
 0x19f   : > { %v1154_v26 = vmax.f32 %v902_v23, 0.0  ;;  %1113 = vmatmul.mubr.bf16.gmra.mrb[108].mxu0 %v3371_v20 }
 0x1a0   : > { %1120 = vmatprep.mubr.bf16.mxu0 %v3374_v22 }
 0x1a1   : > { %v1217_v27 = vpack.c.bf16 %v1154_v26, %v1153_v25 }
 0x1a2   : > { %v906_v28 = vpop.f32.mrb[4].mxu0 }
 0x1a3   : > { %v907_v29 = vadd.f32 %v3915_v16, %v906_v28  ;;  %v908_v30 = vpop.f32.mrb[5].mxu0  ;;  %3039 = vmatprep.mubr.bf16.mxu1 %v1217_v27 }
 0x1a4   : > { %v909_v32 = vpop.f32.mrb[6].mxu0 }
 0x1a5   : > { %v910_v34 = vadd.f32 %v3915_v16, %v909_v32  ;;  %v911_v35 = vpop.f32.mrb[7].mxu0  ;;  %v1155_v36 = vmax.f32 %v907_v29, 0.0 }
 0x1a7   : > { %v1156_v37 = vmax.f32 %v910_v34, 0.0  ;;  %1121 = vmatmul.mubr.bf16.gmra.mrb[112].mxu0 %v3376_v31 }
 0x1a8   : > { %1128 = vmatprep.mubr.bf16.mxu0 %v3378_v33 }
 0x1a9   : > { %v1218_v38 = vpack.c.bf16 %v1156_v37, %v1155_v36 }
 0x1aa   : > { %v914_v39 = vpop.f32.mrb[8].mxu0 }
 0x1ab   : > { %v915_v40 = vadd.f32 %v3915_v16, %v914_v39  ;;  %v916_v41 = vpop.f32.mrb[9].mxu0  ;;  %3040 = vmatmul.mubr.bf16.vlgmr.msra.gmra.mrb[0].mxu1 %v1218_v38 }
 0x1ac   : > { %v917_v43 = vpop.f32.mrb[10].mxu0 }
 0x1ad   : > { %v918_v45 = vadd.f32 %v3915_v16, %v917_v43  ;;  %v919_v46 = vpop.f32.mrb[11].mxu0  ;;  %v1157_v47 = vmax.f32 %v915_v40, 0.0 }
 0x1af   : > { %v1158_v48 = vmax.f32 %v918_v45, 0.0  ;;  %1129 = vmatmul.mubr.bf16.gmra.mrb[116].mxu0 %v3380_v42 }
 0x1b0   : > { %1136 = vmatprep.mubr.bf16.mxu0 %v3381_v44 }
 0x1b1   : > { %v1219_v49 = vpack.c.bf16 %v1158_v48, %v1157_v47 }
 0x1b2   : > { %v922_v50 = vpop.f32.mrb[12].mxu0 }
 0x1b3   : > { %v923_v51 = vadd.f32 %v3915_v16, %v922_v50  ;;  %v924_v52 = vpop.f32.mrb[13].mxu0  ;;  %3043 = vmatprep.mubr.bf16.mxu1 %v1219_v49 }
 0x1b4   : > { %v925_v54 = vpop.f32.mrb[14].mxu0 }
 0x1b5   : > { %v926_v56 = vadd.f32 %v3915_v16, %v925_v54  ;;  %v927_v57 = vpop.f32.mrb[15].mxu0  ;;  %v1159_v58 = vmax.f32 %v923_v51, 0.0 }
 0x1b7   : > { %v1160_v59 = vmax.f32 %v926_v56, 0.0  ;;  %1137 = vmatmul.mubr.bf16.gmra.mrb[120].mxu0 %v3383_v53 }
 0x1b8   : > { %1144 = vmatprep.mubr.bf16.mxu0 %v3384_v55 }
 0x1b9   : > { %v1220_v60 = vpack.c.bf16 %v1160_v59, %v1159_v58 }
 0x1ba   : > { %v930_v61 = vpop.f32.mrb[16].mxu0 }
 0x1bb   : > { %v931_v62 = vadd.f32 %v3915_v16, %v930_v61  ;;  %v932_v63 = vpop.f32.mrb[17].mxu0  ;;  %3044 = vmatmul.mubr.bf16.gmra.mrb[4].mxu1 %v1220_v60 }
 0x1bc   : > { %v933_v1 = vpop.f32.mrb[18].mxu0 }
 0x1bd   : > { %v934_v2 = vadd.f32 %v3915_v16, %v933_v1  ;;  %v935_v3 = vpop.f32.mrb[19].mxu0  ;;  %v1161_v4 = vmax.f32 %v931_v62, 0.0 }
 0x1bf   : > { %v1162_v5 = vmax.f32 %v934_v2, 0.0  ;;  %1145 = vmatmul.mubr.bf16.gmra.mrb[124].mxu0 %v3386_v0 }
 0x1c1   : > { %v1221_v6 = vpack.c.bf16 %v1162_v5, %v1161_v4 }
 0x1c2   : > { %v938_v7 = vpop.f32.mrb[20].mxu0 }
 0x1c3   : > { %v939_v8 = vadd.f32 %v3915_v16, %v938_v7  ;;  %v940_v9 = vpop.f32.mrb[21].mxu0  ;;  %3047 = vmatprep.mubr.bf16.mxu1 %v1221_v6 }
 0x1c4   : > { %v941_v10 = vpop.f32.mrb[22].mxu0 }
 0x1c5   : > { %v942_v11 = vadd.f32 %v3915_v16, %v941_v10  ;;  %v943_v12 = vpop.f32.mrb[23].mxu0  ;;  %v1163_v13 = vmax.f32 %v939_v8, 0.0 }
 0x1c7   : > { %v1164_v14 = vmax.f32 %v942_v11, 0.0 }
 0x1c9   : > { %v1222_v15 = vpack.c.bf16 %v1164_v14, %v1163_v13 }
 0x1ca   : > { %v946_v17 = vpop.f32.mrb[24].mxu0 }
 0x1cb   : > { %v947_v18 = vadd.f32 %v3915_v16, %v946_v17  ;;  %v948_v19 = vpop.f32.mrb[25].mxu0  ;;  %3048 = vmatmul.mubr.bf16.gmra.mrb[8].mxu1 %v1222_v15  ;;  %v3387_v17 = vld [vmem:[#allocation8] sm:$0xff]  }
 0x1cc   : > { %v949_v20 = vpop.f32.mrb[26].mxu0  ;;  %3103 = vmatprep.subr.bf16.mxu1 %v3387_v17 }
 0x1cd   : > { %v950_v21 = vadd.f32 %v3915_v16, %v949_v20  ;;  %v951_v22 = vpop.f32.mrb[27].mxu0  ;;  %v1165_v23 = vmax.f32 %v947_v18, 0.0  ;;  %3104 = vmatpush3.bf16.msra.mxu1 %v3387_v17 }
 0x1cf   : > { %v1166_v24 = vmax.f32 %v950_v21, 0.0 }
 0x1d1   : > { %v1223_v25 = vpack.c.bf16 %v1166_v24, %v1165_v23  ;;  %v3388_v24 = vld [vmem:[#allocation8 + $0x8] sm:$0xff]  }
 0x1d2   : > { %v954_v26 = vpop.f32.mrb[28].mxu0  ;;  %3105 = vmatprep.subr.bf16.mxu1 %v3388_v24 }
 0x1d3   : > { %v955_v27 = vadd.f32 %v3915_v16, %v954_v26  ;;  %v956_v28 = vpop.f32.mrb[29].mxu0  ;;  %3051 = vmatprep.mubr.bf16.mxu1 %v1223_v25  ;;  %3106 = vmatpush3.bf16.msra.mxu1 %v3388_v24 }
 0x1d4   : > { %v957_v29 = vpop.f32.mrb[30].mxu0  ;;  %v3389_v28 = vld [vmem:[#allocation8 + $0x10] sm:$0xff]  }
 0x1d5   : > { %v958_v30 = vadd.f32 %v3915_v16, %v957_v29  ;;  %v959_v31 = vpop.f32.mrb[31].mxu0  ;;  %v1167_v32 = vmax.f32 %v955_v27, 0.0  ;;  %3107 = vmatprep.subr.bf16.mxu1 %v3389_v28 }
 0x1d7   : > { %v1168_v33 = vmax.f32 %v958_v30, 0.0  ;;  %3108 = vmatpush3.bf16.msra.mxu1 %v3389_v28 }
 0x1d9   : > { %v1224_v34 = vpack.c.bf16 %v1168_v33, %v1167_v32 }
 0x1da   : > { %v962_v35 = vpop.f32.mrb[32].mxu0 }
 0x1db   : > { %v963_v36 = vadd.f32 %v3915_v16, %v962_v35  ;;  %v964_v37 = vpop.f32.mrb[33].mxu0  ;;  %3052 = vmatmul.mubr.bf16.gmra.mrb[12].mxu1 %v1224_v34  ;;  %v3390_v35 = vld [vmem:[#allocation8 + $0x18] sm:$0xff]  }
 0x1dc   : > { %v965_v38 = vpop.f32.mrb[34].mxu0  ;;  %3109 = vmatprep.subr.bf16.mxu1 %v3390_v35 }
 0x1dd   : > { %v966_v39 = vadd.f32 %v3915_v16, %v965_v38  ;;  %v967_v40 = vpop.f32.mrb[35].mxu0  ;;  %v1169_v41 = vmax.f32 %v963_v36, 0.0  ;;  %3110 = vmatpush3.bf16.msra.mxu1 %v3390_v35 }
 0x1df   : > { %v1170_v42 = vmax.f32 %v966_v39, 0.0  ;;  %v3391_v39 = vld [vmem:[#allocation8 + $0x20] sm:$0xff]  }
 0x1e0   : > { %3111 = vmatprep.subr.bf16.mxu1 %v3391_v39 }
 0x1e1   : > { %v1225_v43 = vpack.c.bf16 %v1170_v42, %v1169_v41  ;;  %3112 = vmatpush3.bf16.msra.mxu1 %v3391_v39 }
 0x1e2   : > { %v970_v44 = vpop.f32.mrb[36].mxu0 }
 0x1e3   : > { %v971_v45 = vadd.f32 %v3915_v16, %v970_v44  ;;  %v972_v46 = vpop.f32.mrb[37].mxu0  ;;  %3055 = vmatprep.mubr.bf16.mxu1 %v1225_v43 }
 0x1e4   : > { %v973_v47 = vpop.f32.mrb[38].mxu0  ;;  %v3392_v46 = vld [vmem:[#allocation8 + $0x28] sm:$0xff]  }
 0x1e5   : > { %v974_v48 = vadd.f32 %v3915_v16, %v973_v47  ;;  %v975_v49 = vpop.f32.mrb[39].mxu0  ;;  %v1171_v50 = vmax.f32 %v971_v45, 0.0  ;;  %3113 = vmatprep.subr.bf16.mxu1 %v3392_v46 }
 0x1e6   : > { %3114 = vmatpush3.bf16.msra.mxu1 %v3392_v46 }
 0x1e7   : > { %v1172_v51 = vmax.f32 %v974_v48, 0.0 }
 0x1e9   : > { %v1226_v52 = vpack.c.bf16 %v1172_v51, %v1171_v50  ;;  %v3393_v50 = vld [vmem:[#allocation8 + $0x30] sm:$0xff]  }
 0x1ea   : > { %v978_v53 = vpop.f32.mrb[40].mxu0  ;;  %3115 = vmatprep.subr.bf16.mxu1 %v3393_v50 }
 0x1eb   : > { %v979_v54 = vadd.f32 %v3915_v16, %v978_v53  ;;  %v980_v55 = vpop.f32.mrb[41].mxu0  ;;  %3056 = vmatmul.mubr.bf16.gmra.mrb[16].mxu1 %v1226_v52 }
 0x1ec   : > { %v981_v56 = vpop.f32.mrb[42].mxu0  ;;  %3116 = vmatpush3.bf16.msra.mxu1 %v3393_v50 }
 0x1ed   : > { %v982_v57 = vadd.f32 %v3915_v16, %v981_v56  ;;  %v983_v58 = vpop.f32.mrb[43].mxu0  ;;  %v1173_v59 = vmax.f32 %v979_v54, 0.0 }
 0x1ef   : > { %v1174_v60 = vmax.f32 %v982_v57, 0.0  ;;  %v3394_v57 = vld [vmem:[#allocation8 + $0x38] sm:$0xff]  }
 0x1f0   : > { %3117 = vmatprep.subr.bf16.mxu1 %v3394_v57 }
 0x1f1   : > { %v1227_v61 = vpack.c.bf16 %v1174_v60, %v1173_v59  ;;  %3118 = vmatpush3.bf16.msra.mxu1 %v3394_v57 }
 0x1f2   : > { %v986_v62 = vpop.f32.mrb[44].mxu0 }
 0x1f3   : > { %v987_v63 = vadd.f32 %v3915_v16, %v986_v62  ;;  %v988_v0 = vpop.f32.mrb[45].mxu0  ;;  %3059 = vmatprep.mubr.bf16.mxu1 %v1227_v61 }
 0x1f4   : > { %v989_v1 = vpop.f32.mrb[46].mxu0 }
 0x1f5   : > { %v990_v2 = vadd.f32 %v3915_v16, %v989_v1  ;;  %v991_v3 = vpop.f32.mrb[47].mxu0  ;;  %v1175_v4 = vmax.f32 %v987_v63, 0.0 }
 0x1f7   : > { %v1176_v5 = vmax.f32 %v990_v2, 0.0 }
 0x1f9   : > { %v1228_v6 = vpack.c.bf16 %v1176_v5, %v1175_v4 }
 0x1fa   : > { %v994_v7 = vpop.f32.mrb[48].mxu0 }
 0x1fb   : > { %v995_v8 = vadd.f32 %v3915_v16, %v994_v7  ;;  %v996_v9 = vpop.f32.mrb[49].mxu0  ;;  %3060 = vmatmul.mubr.bf16.gmra.mrb[20].mxu1 %v1228_v6 }
 0x1fc   : > { %v997_v10 = vpop.f32.mrb[50].mxu0 }
 0x1fd   : > { %v998_v11 = vadd.f32 %v3915_v16, %v997_v10  ;;  %v999_v12 = vpop.f32.mrb[51].mxu0  ;;  %v1177_v13 = vmax.f32 %v995_v8, 0.0 }
 0x1ff   : > { %v1178_v14 = vmax.f32 %v998_v11, 0.0 }
 0x201   : > { %v1229_v15 = vpack.c.bf16 %v1178_v14, %v1177_v13 }
 0x202   : > { %v1002_v18 = vpop.f32.mrb[52].mxu0 }
 0x203   : > { %v1003_v19 = vadd.f32 %v3915_v16, %v1002_v18  ;;  %v1004_v20 = vpop.f32.mrb[53].mxu0  ;;  %3063 = vmatprep.mubr.bf16.mxu1 %v1229_v15 }
 0x204   : > { %v1005_v21 = vpop.f32.mrb[54].mxu0 }
 0x205   : > { %v1006_v22 = vadd.f32 %v3915_v16, %v1005_v21  ;;  %v1007_v23 = vpop.f32.mrb[55].mxu0  ;;  %v1179_v25 = vmax.f32 %v1003_v19, 0.0 }
 0x207   : > { %v1180_v26 = vmax.f32 %v1006_v22, 0.0 }
 0x209   : > { %v1230_v27 = vpack.c.bf16 %v1180_v26, %v1179_v25 }
 0x20a   : > { %v1010_v29 = vpop.f32.mrb[56].mxu0 }
 0x20b   : > { %v1011_v30 = vadd.f32 %v3915_v16, %v1010_v29  ;;  %v1012_v31 = vpop.f32.mrb[57].mxu0  ;;  %3064 = vmatmul.mubr.bf16.gmra.mrb[24].mxu1 %v1230_v27 }
 0x20c   : > { %v1013_v32 = vpop.f32.mrb[58].mxu0 }
 0x20d   : > { %v1014_v33 = vadd.f32 %v3915_v16, %v1013_v32  ;;  %v1015_v34 = vpop.f32.mrb[59].mxu0  ;;  %v1181_v36 = vmax.f32 %v1011_v30, 0.0 }
 0x20f   : > { %v1182_v37 = vmax.f32 %v1014_v33, 0.0 }
 0x211   : > { %v1231_v38 = vpack.c.bf16 %v1182_v37, %v1181_v36 }
 0x212   : > { %v1018_v40 = vpop.f32.mrb[60].mxu0 }
 0x213   : > { %v1019_v41 = vadd.f32 %v3915_v16, %v1018_v40  ;;  %v1020_v42 = vpop.f32.mrb[61].mxu0  ;;  %3067 = vmatprep.mubr.bf16.mxu1 %v1231_v38 }
 0x214   : > { %v1021_v43 = vpop.f32.mrb[62].mxu0 }
 0x215   : > { %v1022_v44 = vadd.f32 %v3915_v16, %v1021_v43  ;;  %v1023_v45 = vpop.f32.mrb[63].mxu0  ;;  %v1183_v47 = vmax.f32 %v1019_v41, 0.0 }
 0x217   : > { %v1184_v48 = vmax.f32 %v1022_v44, 0.0 }
 0x219   : > { %v1232_v49 = vpack.c.bf16 %v1184_v48, %v1183_v47 }
 0x21a   : > { %v1026_v51 = vpop.f32.mrb[64].mxu0 }
 0x21b   : > { %v1027_v52 = vadd.f32 %v3915_v16, %v1026_v51  ;;  %v1028_v53 = vpop.f32.mrb[65].mxu0  ;;  %3068 = vmatmul.mubr.bf16.gmra.mrb[28].mxu1 %v1232_v49 }
 0x21c   : > { %v1029_v54 = vpop.f32.mrb[66].mxu0 }
 0x21d   : > { %v1030_v55 = vadd.f32 %v3915_v16, %v1029_v54  ;;  %v1031_v56 = vpop.f32.mrb[67].mxu0  ;;  %v1185_v58 = vmax.f32 %v1027_v52, 0.0 }
 0x21f   : > { %v1186_v59 = vmax.f32 %v1030_v55, 0.0 }
 0x221   : > { %v1233_v60 = vpack.c.bf16 %v1186_v59, %v1185_v58 }
 0x222   : > { %v1034_v61 = vpop.f32.mrb[68].mxu0 }
 0x223   : > { %v1035_v62 = vadd.f32 %v3915_v16, %v1034_v61  ;;  %v1036_v63 = vpop.f32.mrb[69].mxu0  ;;  %3071 = vmatprep.mubr.bf16.mxu1 %v1233_v60 }
 0x224   : > { %v1037_v0 = vpop.f32.mrb[70].mxu0 }
 0x225   : > { %v1038_v1 = vadd.f32 %v3915_v16, %v1037_v0  ;;  %v1039_v2 = vpop.f32.mrb[71].mxu0  ;;  %v1187_v3 = vmax.f32 %v1035_v62, 0.0 }
 0x227   : > { %v1188_v4 = vmax.f32 %v1038_v1, 0.0 }
 0x229   : > { %v1234_v5 = vpack.c.bf16 %v1188_v4, %v1187_v3 }
 0x22a   : > { %v1042_v6 = vpop.f32.mrb[72].mxu0 }
 0x22b   : > { %v1043_v7 = vadd.f32 %v3915_v16, %v1042_v6  ;;  %v1044_v8 = vpop.f32.mrb[73].mxu0  ;;  %3072 = vmatmul.mubr.bf16.gmra.mrb[32].mxu1 %v1234_v5 }
 0x22c   : > { %v1045_v9 = vpop.f32.mrb[74].mxu0 }
 0x22d   : > { %v1046_v10 = vadd.f32 %v3915_v16, %v1045_v9  ;;  %v1047_v11 = vpop.f32.mrb[75].mxu0  ;;  %v1189_v12 = vmax.f32 %v1043_v7, 0.0 }
 0x22f   : > { %v1190_v13 = vmax.f32 %v1046_v10, 0.0 }
 0x231   : > { %v1235_v14 = vpack.c.bf16 %v1190_v13, %v1189_v12 }
 0x232   : > { %v1050_v15 = vpop.f32.mrb[76].mxu0 }
 0x233   : > { %v1051_v17 = vadd.f32 %v3915_v16, %v1050_v15  ;;  %v1052_v18 = vpop.f32.mrb[77].mxu0  ;;  %3075 = vmatprep.mubr.bf16.mxu1 %v1235_v14 }
 0x234   : > { %v1053_v19 = vpop.f32.mrb[78].mxu0 }
 0x235   : > { %v1054_v20 = vadd.f32 %v3915_v16, %v1053_v19  ;;  %v1055_v21 = vpop.f32.mrb[79].mxu0  ;;  %v1191_v22 = vmax.f32 %v1051_v17, 0.0 }
 0x237   : > { %v1192_v23 = vmax.f32 %v1054_v20, 0.0 }
 0x239   : > { %v1236_v24 = vpack.c.bf16 %v1192_v23, %v1191_v22 }
 0x23a   : > { %v1058_v25 = vpop.f32.mrb[80].mxu0 }
 0x23b   : > { %v1059_v26 = vadd.f32 %v3915_v16, %v1058_v25  ;;  %v1060_v27 = vpop.f32.mrb[81].mxu0  ;;  %3076 = vmatmul.mubr.bf16.gmra.mrb[36].mxu1 %v1236_v24 }
 0x23c   : > { %v1061_v28 = vpop.f32.mrb[82].mxu0 }
 0x23d   : > { %v1062_v29 = vadd.f32 %v3915_v16, %v1061_v28  ;;  %v1063_v30 = vpop.f32.mrb[83].mxu0  ;;  %v1193_v31 = vmax.f32 %v1059_v26, 0.0 }
 0x23f   : > { %v1194_v32 = vmax.f32 %v1062_v29, 0.0 }
 0x241   : > { %v1237_v33 = vpack.c.bf16 %v1194_v32, %v1193_v31 }
 0x242   : > { %v1066_v34 = vpop.f32.mrb[84].mxu0 }
 0x243   : > { %v1067_v35 = vadd.f32 %v3915_v16, %v1066_v34  ;;  %v1068_v36 = vpop.f32.mrb[85].mxu0  ;;  %3079 = vmatprep.mubr.bf16.mxu1 %v1237_v33 }
 0x244   : > { %v1069_v37 = vpop.f32.mrb[86].mxu0 }
 0x245   : > { %v1070_v38 = vadd.f32 %v3915_v16, %v1069_v37  ;;  %v1071_v39 = vpop.f32.mrb[87].mxu0  ;;  %v1195_v40 = vmax.f32 %v1067_v35, 0.0 }
 0x247   : > { %v1196_v41 = vmax.f32 %v1070_v38, 0.0  ;;  %v3986_v38 = vld [vmem:[%s4218_s4] ss:$0 sm:$0xff] }
 0x249   : > { %v1238_v42 = vpack.c.bf16 %v1196_v41, %v1195_v40 }
 0x24a   : > { %v1074_v43 = vpop.f32.mrb[88].mxu0 }
 0x24b   : > { %v1075_v44 = vadd.f32 %v3915_v16, %v1074_v43  ;;  %v1076_v45 = vpop.f32.mrb[89].mxu0  ;;  %3080 = vmatmul.mubr.bf16.gmra.mrb[40].mxu1 %v1238_v42 }
 0x24c   : > { %v1077_v46 = vpop.f32.mrb[90].mxu0 }
 0x24d   : > { %v1078_v47 = vadd.f32 %v3915_v16, %v1077_v46  ;;  %v1079_v48 = vpop.f32.mrb[91].mxu0  ;;  %v1197_v49 = vmax.f32 %v1075_v44, 0.0 }
 0x24f   : > { %v1198_v50 = vmax.f32 %v1078_v47, 0.0 }
 0x251   : > { %v1239_v51 = vpack.c.bf16 %v1198_v50, %v1197_v49 }
 0x252   : > { %v1082_v52 = vpop.f32.mrb[92].mxu0 }
 0x253   : > { %v1083_v53 = vadd.f32 %v3915_v16, %v1082_v52  ;;  %v1084_v54 = vpop.f32.mrb[93].mxu0  ;;  %3083 = vmatprep.mubr.bf16.mxu1 %v1239_v51 }
 0x254   : > { %v1085_v55 = vpop.f32.mrb[94].mxu0 }
 0x255   : > { %v1086_v56 = vadd.f32 %v3915_v16, %v1085_v55  ;;  %v1087_v57 = vpop.f32.mrb[95].mxu0  ;;  %v1199_v58 = vmax.f32 %v1083_v53, 0.0 }
 0x257   : > { %v1200_v59 = vmax.f32 %v1086_v56, 0.0 }
 0x259   : > { %v1240_v60 = vpack.c.bf16 %v1200_v59, %v1199_v58 }
 0x25a   : > { %v1090_v61 = vpop.f32.mrb[96].mxu0 }
 0x25b   : > { %v1091_v62 = vadd.f32 %v3915_v16, %v1090_v61  ;;  %v1092_v63 = vpop.f32.mrb[97].mxu0  ;;  %3084 = vmatmul.mubr.bf16.gmra.mrb[44].mxu1 %v1240_v60 }
 0x25c   : > { %v1093_v0 = vpop.f32.mrb[98].mxu0 }
 0x25d   : > { %v1094_v1 = vadd.f32 %v3915_v16, %v1093_v0  ;;  %v1095_v2 = vpop.f32.mrb[99].mxu0  ;;  %v1201_v3 = vmax.f32 %v1091_v62, 0.0 }
 0x25f   : > { %v1202_v4 = vmax.f32 %v1094_v1, 0.0 }
 0x261   : > { %v1241_v5 = vpack.c.bf16 %v1202_v4, %v1201_v3 }
 0x262   : > { %v1098_v6 = vpop.f32.mrb[100].mxu0 }
 0x263   : > { %v1099_v7 = vadd.f32 %v3915_v16, %v1098_v6  ;;  %v1100_v8 = vpop.f32.mrb[101].mxu0  ;;  %3087 = vmatprep.mubr.bf16.mxu1 %v1241_v5 }
 0x264   : > { %v1101_v9 = vpop.f32.mrb[102].mxu0 }
 0x265   : > { %v1102_v10 = vadd.f32 %v3915_v16, %v1101_v9  ;;  %v1103_v11 = vpop.f32.mrb[103].mxu0  ;;  %v1203_v12 = vmax.f32 %v1099_v7, 0.0 }
 0x267   : > { %v1204_v13 = vmax.f32 %v1102_v10, 0.0 }
 0x269   : > { %v1242_v14 = vpack.c.bf16 %v1204_v13, %v1203_v12 }
 0x26a   : > { %v1106_v15 = vpop.f32.mrb[104].mxu0 }
 0x26b   : > { %v1107_v17 = vadd.f32 %v3915_v16, %v1106_v15  ;;  %v1108_v18 = vpop.f32.mrb[105].mxu0  ;;  %3088 = vmatmul.mubr.bf16.gmra.mrb[48].mxu1 %v1242_v14 }
 0x26c   : > { %v1109_v19 = vpop.f32.mrb[106].mxu0 }
 0x26d   : > { %v1110_v20 = vadd.f32 %v3915_v16, %v1109_v19  ;;  %v1111_v21 = vpop.f32.mrb[107].mxu0  ;;  %v1205_v22 = vmax.f32 %v1107_v17, 0.0 }
 0x26f   : > { %v1206_v23 = vmax.f32 %v1110_v20, 0.0 }
 0x271   : > { %v1243_v24 = vpack.c.bf16 %v1206_v23, %v1205_v22 }
 0x272   : > { %v1114_v25 = vpop.f32.mrb[108].mxu0 }
 0x273   : > { %v1115_v26 = vadd.f32 %v3915_v16, %v1114_v25  ;;  %v1116_v27 = vpop.f32.mrb[109].mxu0  ;;  %3091 = vmatprep.mubr.bf16.mxu1 %v1243_v24 }
 0x274   : > { %v1117_v28 = vpop.f32.mrb[110].mxu0 }
 0x275   : > { %v1118_v29 = vadd.f32 %v3915_v16, %v1117_v28  ;;  %v1119_v30 = vpop.f32.mrb[111].mxu0  ;;  %v1207_v31 = vmax.f32 %v1115_v26, 0.0 }
 0x277   : > { %v1208_v32 = vmax.f32 %v1118_v29, 0.0 }
 0x279   : > { %v1244_v33 = vpack.c.bf16 %v1208_v32, %v1207_v31 }
 0x27a   : > { %v1122_v34 = vpop.f32.mrb[112].mxu0 }
 0x27b   : > { %v1123_v35 = vadd.f32 %v3915_v16, %v1122_v34  ;;  %v1124_v36 = vpop.f32.mrb[113].mxu0  ;;  %3092 = vmatmul.mubr.bf16.gmra.mrb[52].mxu1 %v1244_v33 }
 0x27c   : > { %v1125_v37 = vpop.f32.mrb[114].mxu0 }
 0x27d   : > { %v1126_v39 = vadd.f32 %v3915_v16, %v1125_v37  ;;  %v1127_v40 = vpop.f32.mrb[115].mxu0  ;;  %v1209_v42 = vmax.f32 %v1123_v35, 0.0 }
 0x27e   : > { %v3041_v41 = vpop.f32.mrb[0].mxu1 }
 0x27f   : > { %v1210_v43 = vmax.f32 %v1126_v39, 0.0  ;;  %v1363_v44 = vadd.f32 %v3041_v41, %v3986_v38  ;;  %v1354_v45 = vpop.f32.mrb[1].mxu1 }
 0x280   : > { %v1355_v46 = vadd.f32 %v3986_v38, %v1354_v45  ;;  %v3042_v47 = vpop.f32.mrb[2].mxu1 }
 0x281   : > { %v1245_v48 = vpack.c.bf16 %v1210_v43, %v1209_v42  ;;  %v1366_v49 = vadd.f32 %v3042_v47, %v3986_v38  ;;  %v1357_v50 = vpop.f32.mrb[3].mxu1  ;;  %v1611_v53 = vmax.f32 %v1363_v44, 0.0 }
 0x282   : > { %v1358_v51 = vadd.f32 %v3986_v38, %v1357_v50  ;;  %v1130_v52 = vpop.f32.mrb[116].mxu0  ;;  %v1609_v57 = vmax.f32 %v1355_v46, 0.0 }
 0x283   : > { %v1612_v54 = vmax.f32 %v1366_v49, 0.0  ;;  %v1131_v55 = vadd.f32 %v3915_v16, %v1130_v52  ;;  %v1132_v56 = vpop.f32.mrb[117].mxu0  ;;  %3095 = vmatprep.mubr.bf16.mxu1 %v1245_v48 }
 0x284   : > { %v1610_v58 = vmax.f32 %v1358_v51, 0.0  ;;  %v1133_v59 = vpop.f32.mrb[118].mxu0 }
 0x285   : > { %v1674_v60 = vpack.c.bf16 %v1612_v54, %v1611_v53  ;;  %v1134_v61 = vadd.f32 %v3915_v16, %v1133_v59  ;;  %v1135_v62 = vpop.f32.mrb[119].mxu0  ;;  %v1211_v0 = vmax.f32 %v1131_v55, 0.0 }
 0x286   : > { %v1673_v63 = vpack.c.bf16 %v1610_v58, %v1609_v57 }
 0x287   : > { %v1212_v1 = vmax.f32 %v1134_v61, 0.0 }
 0x289   : > { %v1246_v2 = vpack.c.bf16 %v1212_v1, %v1211_v0 }
 0x28a   : > { %v1138_v3 = vpop.f32.mrb[120].mxu0 }
 0x28b   : > { %v1139_v4 = vadd.f32 %v3915_v16, %v1138_v3  ;;  %v1140_v5 = vpop.f32.mrb[121].mxu0  ;;  %3096 = vmatmul.mubr.bf16.gmra.mrb[56].mxu1 %v1246_v2 }
 0x28c   : > { %v1141_v6 = vpop.f32.mrb[122].mxu0 }
 0x28d   : > { %v1142_v7 = vadd.f32 %v3915_v16, %v1141_v6  ;;  %v1143_v8 = vpop.f32.mrb[123].mxu0  ;;  %v1213_v10 = vmax.f32 %v1139_v4, 0.0 }
 0x28e   : > { %v3045_v9 = vpop.f32.mrb[4].mxu1 }
 0x28f   : > { %v1214_v11 = vmax.f32 %v1142_v7, 0.0  ;;  %v1379_v12 = vadd.f32 %v3045_v9, %v3986_v38  ;;  %v1370_v13 = vpop.f32.mrb[5].mxu1 }
 0x290   : > { %v1371_v14 = vadd.f32 %v3986_v38, %v1370_v13  ;;  %v3046_v15 = vpop.f32.mrb[6].mxu1 }
 0x291   : > { %v1247_v17 = vpack.c.bf16 %v1214_v11, %v1213_v10  ;;  %v1382_v18 = vadd.f32 %v3046_v15, %v3986_v38  ;;  %v1373_v19 = vpop.f32.mrb[7].mxu1  ;;  %v1615_v22 = vmax.f32 %v1379_v12, 0.0 }
 0x292   : > { %v1374_v20 = vadd.f32 %v3986_v38, %v1373_v19  ;;  %v1146_v21 = vpop.f32.mrb[124].mxu0  ;;  %v1613_v26 = vmax.f32 %v1371_v14, 0.0 }
 0x293   : > { %v1616_v23 = vmax.f32 %v1382_v18, 0.0  ;;  %v1147_v24 = vadd.f32 %v3915_v16, %v1146_v21  ;;  %v1148_v25 = vpop.f32.mrb[125].mxu0  ;;  %3099 = vmatprep.mubr.bf16.mxu1 %v1247_v17 }
 0x294   : > { %v1614_v27 = vmax.f32 %v1374_v20, 0.0  ;;  %v1149_v28 = vpop.f32.mrb[126].mxu0 }
 0x295   : > { %v1676_v29 = vpack.c.bf16 %v1616_v23, %v1615_v22  ;;  %v1150_v30 = vadd.f32 %v3915_v16, %v1149_v28  ;;  %v1151_v31 = vpop.f32.mrb[127].mxu0  ;;  %v1215_v33 = vmax.f32 %v1147_v24, 0.0 }
 0x296   : > { %v1675_v32 = vpack.c.bf16 %v1614_v27, %v1613_v26 }
 0x297   : > { %v1216_v34 = vmax.f32 %v1150_v30, 0.0 }
 0x299   : > { %v1248_v35 = vpack.c.bf16 %v1216_v34, %v1215_v33 }
 0x29b   : > { %3100 = vmatmul.mubr.bf16.gmra.mrb[60].mxu1 %v1248_v35 }
 0x29c   : > { %3119 = vmatprep.mubr.bf16.mxu1 %v1673_v63 }
 0x29e   : > { %v3049_v36 = vpop.f32.mrb[8].mxu1 }
 0x29f   : > { %v1395_v37 = vadd.f32 %v3049_v36, %v3986_v38  ;;  %v1386_v39 = vpop.f32.mrb[9].mxu1 }
 0x2a0   : > { %v1387_v40 = vadd.f32 %v3986_v38, %v1386_v39  ;;  %v3050_v41 = vpop.f32.mrb[10].mxu1 }
 0x2a1   : > { %v1398_v42 = vadd.f32 %v3050_v41, %v3986_v38  ;;  %v1389_v43 = vpop.f32.mrb[11].mxu1  ;;  %v1619_v16 = vmax.f32 %v1395_v37, 0.0 }
 0x2a2   : > { %v1390_v44 = vadd.f32 %v3986_v38, %v1389_v43  ;;  %v1617_v46 = vmax.f32 %v1387_v40, 0.0 }
 0x2a3   : > { %v1620_v45 = vmax.f32 %v1398_v42, 0.0  ;;  %3120 = vmatmul.mubr.bf16.vlgmr.msra.gmra.mrb[64].mxu1 %v1674_v60 }
 0x2a4   : > { %v1618_v47 = vmax.f32 %v1390_v44, 0.0  ;;  %3123 = vmatprep.mubr.bf16.mxu1 %v1675_v32 }
 0x2a5   : > { %v1678_v48 = vpack.c.bf16 %v1620_v45, %v1619_v16 }
 0x2a6   : > { %v1677_v49 = vpack.c.bf16 %v1618_v47, %v1617_v46 }
 0x2ab   : > { %3124 = vmatmul.mubr.bf16.gmra.mrb[68].mxu1 %v1676_v29 }
 0x2ac   : > { %3127 = vmatprep.mubr.bf16.mxu1 %v1677_v49 }
 0x2ae   : > { %v3053_v50 = vpop.f32.mrb[12].mxu1 }
 0x2af   : > { %v1411_v51 = vadd.f32 %v3053_v50, %v3986_v38  ;;  %v1402_v52 = vpop.f32.mrb[13].mxu1 }
 0x2b0   : > { %v1403_v53 = vadd.f32 %v3986_v38, %v1402_v52  ;;  %v3054_v54 = vpop.f32.mrb[14].mxu1 }
 0x2b1   : > { %v1414_v55 = vadd.f32 %v3054_v54, %v3986_v38  ;;  %v1405_v56 = vpop.f32.mrb[15].mxu1  ;;  %v1623_v58 = vmax.f32 %v1411_v51, 0.0 }
 0x2b2   : > { %v1406_v57 = vadd.f32 %v3986_v38, %v1405_v56  ;;  %v1621_v60 = vmax.f32 %v1403_v53, 0.0 }
 0x2b3   : > { %v1624_v59 = vmax.f32 %v1414_v55, 0.0  ;;  %3128 = vmatmul.mubr.bf16.gmra.mrb[72].mxu1 %v1678_v48 }
 0x2b4   : > { %v1622_v61 = vmax.f32 %v1406_v57, 0.0 }
 0x2b5   : > { %v1680_v62 = vpack.c.bf16 %v1624_v59, %v1623_v58 }
 0x2b6   : > { %v1679_v63 = vpack.c.bf16 %v1622_v61, %v1621_v60 }
 0x2b8   : > { %3131 = vmatprep.mubr.bf16.mxu1 %v1679_v63 }
 0x2bb   : > { %3132 = vmatmul.mubr.bf16.gmra.mrb[76].mxu1 %v1680_v62 }
 0x2be   : > { %v3057_v0 = vpop.f32.mrb[16].mxu1 }
 0x2bf   : > { %v1427_v1 = vadd.f32 %v3057_v0, %v3986_v38  ;;  %v1418_v2 = vpop.f32.mrb[17].mxu1 }
 0x2c0   : > { %v1419_v3 = vadd.f32 %v3986_v38, %v1418_v2  ;;  %v3058_v4 = vpop.f32.mrb[18].mxu1 }
 0x2c1   : > { %v1430_v5 = vadd.f32 %v3058_v4, %v3986_v38  ;;  %v1421_v6 = vpop.f32.mrb[19].mxu1  ;;  %v1627_v8 = vmax.f32 %v1427_v1, 0.0 }
 0x2c2   : > { %v1422_v7 = vadd.f32 %v3986_v38, %v1421_v6  ;;  %v1625_v10 = vmax.f32 %v1419_v3, 0.0 }
 0x2c3   : > { %v1628_v9 = vmax.f32 %v1430_v5, 0.0 }
 0x2c4   : > { %v1626_v11 = vmax.f32 %v1422_v7, 0.0 }
 0x2c5   : > { %v1682_v12 = vpack.c.bf16 %v1628_v9, %v1627_v8 }
 0x2c6   : > { %v1681_v13 = vpack.c.bf16 %v1626_v11, %v1625_v10 }
 0x2c8   : > { %3135 = vmatprep.mubr.bf16.mxu1 %v1681_v13 }
 0x2c9   : > { %3136 = vmatmul.mubr.bf16.gmra.mrb[80].mxu1 %v1682_v12 }
 0x2ce   : > { %v3061_v14 = vpop.f32.mrb[20].mxu1 }
 0x2cf   : > { %v1443_v15 = vadd.f32 %v3061_v14, %v3986_v38  ;;  %v1434_v17 = vpop.f32.mrb[21].mxu1 }
 0x2d0   : > { %v1435_v18 = vadd.f32 %v3986_v38, %v1434_v17  ;;  %v3062_v19 = vpop.f32.mrb[22].mxu1 }
 0x2d1   : > { %v1446_v20 = vadd.f32 %v3062_v19, %v3986_v38  ;;  %v1437_v21 = vpop.f32.mrb[23].mxu1  ;;  %v1631_v23 = vmax.f32 %v1443_v15, 0.0 }
 0x2d2   : > { %v1438_v22 = vadd.f32 %v3986_v38, %v1437_v21  ;;  %v1629_v25 = vmax.f32 %v1435_v18, 0.0 }
 0x2d3   : > { %v1632_v24 = vmax.f32 %v1446_v20, 0.0 }
 0x2d4   : > { %v1630_v26 = vmax.f32 %v1438_v22, 0.0 }
 0x2d5   : > { %v1684_v27 = vpack.c.bf16 %v1632_v24, %v1631_v23 }
 0x2d6   : > { %v1683_v28 = vpack.c.bf16 %v1630_v26, %v1629_v25 }
 0x2d8   : > { %3139 = vmatprep.mubr.bf16.mxu1 %v1683_v28 }
 0x2d9   : > { %3140 = vmatmul.mubr.bf16.gmra.mrb[84].mxu1 %v1684_v27 }
 0x2de   : > { %v3065_v29 = vpop.f32.mrb[24].mxu1 }
 0x2df   : > { %v1459_v30 = vadd.f32 %v3065_v29, %v3986_v38  ;;  %v1450_v31 = vpop.f32.mrb[25].mxu1 }
 0x2e0   : > { %v1451_v32 = vadd.f32 %v3986_v38, %v1450_v31  ;;  %v3066_v33 = vpop.f32.mrb[26].mxu1 }
 0x2e1   : > { %v1462_v34 = vadd.f32 %v3066_v33, %v3986_v38  ;;  %v1453_v35 = vpop.f32.mrb[27].mxu1  ;;  %v1635_v37 = vmax.f32 %v1459_v30, 0.0 }
 0x2e2   : > { %v1454_v36 = vadd.f32 %v3986_v38, %v1453_v35  ;;  %v1633_v40 = vmax.f32 %v1451_v32, 0.0 }
 0x2e3   : > { %v1636_v39 = vmax.f32 %v1462_v34, 0.0 }
 0x2e4   : > { %v1634_v41 = vmax.f32 %v1454_v36, 0.0 }
 0x2e5   : > { %v1686_v42 = vpack.c.bf16 %v1636_v39, %v1635_v37 }
 0x2e6   : > { %v1685_v43 = vpack.c.bf16 %v1634_v41, %v1633_v40 }
 0x2e8   : > { %3143 = vmatprep.mubr.bf16.mxu1 %v1685_v43 }
 0x2e9   : > { %3144 = vmatmul.mubr.bf16.gmra.mrb[88].mxu1 %v1686_v42 }
 0x2ee   : > { %v3069_v44 = vpop.f32.mrb[28].mxu1 }
 0x2ef   : > { %v1475_v16 = vadd.f32 %v3069_v44, %v3986_v38  ;;  %v1466_v45 = vpop.f32.mrb[29].mxu1 }
 0x2f0   : > { %v1467_v46 = vadd.f32 %v3986_v38, %v1466_v45  ;;  %v3070_v47 = vpop.f32.mrb[30].mxu1 }
 0x2f1   : > { %v1478_v48 = vadd.f32 %v3070_v47, %v3986_v38  ;;  %v1469_v49 = vpop.f32.mrb[31].mxu1  ;;  %v1639_v51 = vmax.f32 %v1475_v16, 0.0 }
 0x2f2   : > { %v1470_v50 = vadd.f32 %v3986_v38, %v1469_v49  ;;  %v1637_v53 = vmax.f32 %v1467_v46, 0.0 }
 0x2f3   : > { %v1640_v52 = vmax.f32 %v1478_v48, 0.0 }
 0x2f4   : > { %v1638_v54 = vmax.f32 %v1470_v50, 0.0 }
 0x2f5   : > { %v1688_v55 = vpack.c.bf16 %v1640_v52, %v1639_v51 }
 0x2f6   : > { %v1687_v56 = vpack.c.bf16 %v1638_v54, %v1637_v53 }
 0x2f8   : > { %3147 = vmatprep.mubr.bf16.mxu1 %v1687_v56 }
 0x2f9   : > { %3148 = vmatmul.mubr.bf16.gmra.mrb[92].mxu1 %v1688_v55 }
 0x2fe   : > { %v3073_v57 = vpop.f32.mrb[32].mxu1 }
 0x2ff   : > { %v1491_v58 = vadd.f32 %v3073_v57, %v3986_v38  ;;  %v1482_v59 = vpop.f32.mrb[33].mxu1 }
 0x300   : > { %v1483_v60 = vadd.f32 %v3986_v38, %v1482_v59  ;;  %v3074_v61 = vpop.f32.mrb[34].mxu1 }
 0x301   : > { %v1494_v62 = vadd.f32 %v3074_v61, %v3986_v38  ;;  %v1485_v63 = vpop.f32.mrb[35].mxu1  ;;  %v1643_v1 = vmax.f32 %v1491_v58, 0.0 }
 0x302   : > { %v1486_v0 = vadd.f32 %v3986_v38, %v1485_v63  ;;  %v1641_v3 = vmax.f32 %v1483_v60, 0.0 }
 0x303   : > { %v1644_v2 = vmax.f32 %v1494_v62, 0.0 }
 0x304   : > { %v1642_v4 = vmax.f32 %v1486_v0, 0.0 }
 0x305   : > { %v1690_v5 = vpack.c.bf16 %v1644_v2, %v1643_v1 }
 0x306   : > { %v1689_v6 = vpack.c.bf16 %v1642_v4, %v1641_v3 }
 0x308   : > { %3151 = vmatprep.mubr.bf16.mxu1 %v1689_v6 }
 0x309   : > { %3152 = vmatmul.mubr.bf16.gmra.mrb[96].mxu1 %v1690_v5 }
 0x30e   : > { %v3077_v7 = vpop.f32.mrb[36].mxu1 }
 0x30f   : > { %v1507_v8 = vadd.f32 %v3077_v7, %v3986_v38  ;;  %v1498_v9 = vpop.f32.mrb[37].mxu1 }
 0x310   : > { %v1499_v10 = vadd.f32 %v3986_v38, %v1498_v9  ;;  %v3078_v11 = vpop.f32.mrb[38].mxu1 }
 0x311   : > { %v1510_v12 = vadd.f32 %v3078_v11, %v3986_v38  ;;  %v1501_v13 = vpop.f32.mrb[39].mxu1  ;;  %v1647_v15 = vmax.f32 %v1507_v8, 0.0 }
 0x312   : > { %v1502_v14 = vadd.f32 %v3986_v38, %v1501_v13  ;;  %v1645_v18 = vmax.f32 %v1499_v10, 0.0 }
 0x313   : > { %v1648_v17 = vmax.f32 %v1510_v12, 0.0 }
 0x314   : > { %v1646_v19 = vmax.f32 %v1502_v14, 0.0 }
 0x315   : > { %v1692_v20 = vpack.c.bf16 %v1648_v17, %v1647_v15 }
 0x316   : > { %v1691_v21 = vpack.c.bf16 %v1646_v19, %v1645_v18 }
 0x318   : > { %3155 = vmatprep.mubr.bf16.mxu1 %v1691_v21 }
 0x319   : > { %3156 = vmatmul.mubr.bf16.gmra.mrb[100].mxu1 %v1692_v20 }
 0x31e   : > { %v3081_v22 = vpop.f32.mrb[40].mxu1 }
 0x31f   : > { %v1523_v23 = vadd.f32 %v3081_v22, %v3986_v38  ;;  %v1514_v24 = vpop.f32.mrb[41].mxu1 }
 0x320   : > { %v1515_v25 = vadd.f32 %v3986_v38, %v1514_v24  ;;  %v3082_v26 = vpop.f32.mrb[42].mxu1 }
 0x321   : > { %v1526_v27 = vadd.f32 %v3082_v26, %v3986_v38  ;;  %v1517_v28 = vpop.f32.mrb[43].mxu1  ;;  %v1651_v30 = vmax.f32 %v1523_v23, 0.0 }
 0x322   : > { %v1518_v29 = vadd.f32 %v3986_v38, %v1517_v28  ;;  %v1649_v32 = vmax.f32 %v1515_v25, 0.0 }
 0x323   : > { %v1652_v31 = vmax.f32 %v1526_v27, 0.0 }
 0x324   : > { %v1650_v33 = vmax.f32 %v1518_v29, 0.0 }
 0x325   : > { %v1694_v34 = vpack.c.bf16 %v1652_v31, %v1651_v30 }
 0x326   : > { %v1693_v35 = vpack.c.bf16 %v1650_v33, %v1649_v32 }
 0x328   : > { %3159 = vmatprep.mubr.bf16.mxu1 %v1693_v35 }
 0x329   : > { %3160 = vmatmul.mubr.bf16.gmra.mrb[104].mxu1 %v1694_v34 }
 0x32e   : > { %v3085_v36 = vpop.f32.mrb[44].mxu1 }
 0x32f   : > { %v1539_v37 = vadd.f32 %v3085_v36, %v3986_v38  ;;  %v1530_v39 = vpop.f32.mrb[45].mxu1 }
 0x330   : > { %v1531_v40 = vadd.f32 %v3986_v38, %v1530_v39  ;;  %v3086_v41 = vpop.f32.mrb[46].mxu1 }
 0x331   : > { %v1542_v42 = vadd.f32 %v3086_v41, %v3986_v38  ;;  %v1533_v43 = vpop.f32.mrb[47].mxu1  ;;  %v1655_v16 = vmax.f32 %v1539_v37, 0.0 }
 0x332   : > { %v1534_v44 = vadd.f32 %v3986_v38, %v1533_v43  ;;  %v1653_v46 = vmax.f32 %v1531_v40, 0.0 }
 0x333   : > { %v1656_v45 = vmax.f32 %v1542_v42, 0.0 }
 0x334   : > { %v1654_v47 = vmax.f32 %v1534_v44, 0.0 }
 0x335   : > { %v1696_v48 = vpack.c.bf16 %v1656_v45, %v1655_v16  ;;  %v4062_v16 = vld [vmem:[%s4220_s6] ss:$0 sm:$0xff] }
 0x336   : > { %v1695_v49 = vpack.c.bf16 %v1654_v47, %v1653_v46 }
 0x338   : > { %3163 = vmatprep.mubr.bf16.mxu1 %v1695_v49 }
 0x339   : > { %3164 = vmatmul.mubr.bf16.gmra.mrb[108].mxu1 %v1696_v48 }
 0x33e   : > { %v3089_v50 = vpop.f32.mrb[48].mxu1 }
 0x33f   : > { %v1555_v51 = vadd.f32 %v3089_v50, %v3986_v38  ;;  %v1546_v52 = vpop.f32.mrb[49].mxu1 }
 0x340   : > { %v1547_v53 = vadd.f32 %v3986_v38, %v1546_v52  ;;  %v3090_v54 = vpop.f32.mrb[50].mxu1 }
 0x341   : > { %v1558_v55 = vadd.f32 %v3090_v54, %v3986_v38  ;;  %v1549_v56 = vpop.f32.mrb[51].mxu1  ;;  %v1659_v58 = vmax.f32 %v1555_v51, 0.0 }
 0x342   : > { %v1550_v57 = vadd.f32 %v3986_v38, %v1549_v56  ;;  %v1657_v60 = vmax.f32 %v1547_v53, 0.0 }
 0x343   : > { %v1660_v59 = vmax.f32 %v1558_v55, 0.0 }
 0x344   : > { %v1658_v61 = vmax.f32 %v1550_v57, 0.0 }
 0x345   : > { %v1698_v62 = vpack.c.bf16 %v1660_v59, %v1659_v58 }
 0x346   : > { %v1697_v63 = vpack.c.bf16 %v1658_v61, %v1657_v60 }
 0x348   : > { %3167 = vmatprep.mubr.bf16.mxu1 %v1697_v63 }
 0x349   : > { %3168 = vmatmul.mubr.bf16.gmra.mrb[112].mxu1 %v1698_v62 }
 0x34e   : > { %v3093_v0 = vpop.f32.mrb[52].mxu1 }
 0x34f   : > { %v1571_v1 = vadd.f32 %v3093_v0, %v3986_v38  ;;  %v1562_v2 = vpop.f32.mrb[53].mxu1 }
 0x350   : > { %v1563_v3 = vadd.f32 %v3986_v38, %v1562_v2  ;;  %v3094_v4 = vpop.f32.mrb[54].mxu1 }
 0x351   : > { %v1574_v5 = vadd.f32 %v3094_v4, %v3986_v38  ;;  %v1565_v6 = vpop.f32.mrb[55].mxu1  ;;  %v1663_v8 = vmax.f32 %v1571_v1, 0.0 }
 0x352   : > { %v1566_v7 = vadd.f32 %v3986_v38, %v1565_v6  ;;  %v1661_v10 = vmax.f32 %v1563_v3, 0.0 }
 0x353   : > { %v1664_v9 = vmax.f32 %v1574_v5, 0.0 }
 0x354   : > { %v1662_v11 = vmax.f32 %v1566_v7, 0.0 }
 0x355   : > { %v1700_v12 = vpack.c.bf16 %v1664_v9, %v1663_v8 }
 0x356   : > { %v1699_v13 = vpack.c.bf16 %v1662_v11, %v1661_v10 }
 0x358   : > { %3171 = vmatprep.mubr.bf16.mxu1 %v1699_v13 }
 0x359   : > { %3172 = vmatmul.mubr.bf16.gmra.mrb[116].mxu1 %v1700_v12 }
 0x35e   : > { %v3097_v14 = vpop.f32.mrb[56].mxu1 }
 0x35f   : > { %v1587_v15 = vadd.f32 %v3097_v14, %v3986_v38  ;;  %v1578_v17 = vpop.f32.mrb[57].mxu1 }
 0x360   : > { %v1579_v18 = vadd.f32 %v3986_v38, %v1578_v17  ;;  %v3098_v19 = vpop.f32.mrb[58].mxu1 }
 0x361   : > { %v1590_v20 = vadd.f32 %v3098_v19, %v3986_v38  ;;  %v1581_v21 = vpop.f32.mrb[59].mxu1  ;;  %v1667_v23 = vmax.f32 %v1587_v15, 0.0 }
 0x362   : > { %v1582_v22 = vadd.f32 %v3986_v38, %v1581_v21  ;;  %v1665_v25 = vmax.f32 %v1579_v18, 0.0 }
 0x363   : > { %v1668_v24 = vmax.f32 %v1590_v20, 0.0 }
 0x364   : > { %v1666_v26 = vmax.f32 %v1582_v22, 0.0 }
 0x365   : > { %v1702_v27 = vpack.c.bf16 %v1668_v24, %v1667_v23 }
 0x366   : > { %v1701_v28 = vpack.c.bf16 %v1666_v26, %v1665_v25 }
 0x368   : > { %3175 = vmatprep.mubr.bf16.mxu1 %v1701_v28 }
 0x369   : > { %3176 = vmatmul.mubr.bf16.gmra.mrb[120].mxu1 %v1702_v27 }
 0x36e   : > { %v3101_v29 = vpop.f32.mrb[60].mxu1 }
 0x36f   : > { %v1603_v30 = vadd.f32 %v3101_v29, %v3986_v38  ;;  %v1594_v31 = vpop.f32.mrb[61].mxu1 }
 0x370   : > { %v1595_v32 = vadd.f32 %v3986_v38, %v1594_v31  ;;  %v3102_v33 = vpop.f32.mrb[62].mxu1 }
 0x371   : > { %v1606_v34 = vadd.f32 %v3102_v33, %v3986_v38  ;;  %v1597_v35 = vpop.f32.mrb[63].mxu1  ;;  %v1671_v37 = vmax.f32 %v1603_v30, 0.0 }
 0x372   : > { %v1598_v36 = vadd.f32 %v3986_v38, %v1597_v35  ;;  %v1669_v40 = vmax.f32 %v1595_v32, 0.0 }
 0x373   : > { %v1672_v39 = vmax.f32 %v1606_v34, 0.0 }
 0x374   : > { %v1670_v41 = vmax.f32 %v1598_v36, 0.0 }
 0x375   : > { %v1704_v42 = vpack.c.bf16 %v1672_v39, %v1671_v37 }
 0x376   : > { %v1703_v43 = vpack.c.bf16 %v1670_v41, %v1669_v40  ;;  %v3121_v44 = vpop.f32.mrb[64].mxu1 }
 0x377   : > { %v1810_v45 = vpop.f32.mrb[65].mxu1  ;;  %v1819_v47 = vadd.f32 %v3121_v44, %v4062_v16 }
 0x378   : > { %v3122_v46 = vpop.f32.mrb[66].mxu1  ;;  %3179 = vmatprep.mubr.bf16.mxu1 %v1703_v43  ;;  %v1811_v49 = vadd.f32 %v4062_v16, %v1810_v45 }
 0x379   : > { %v1822_v38 = vadd.f32 %v3122_v46, %v4062_v16  ;;  %v1813_v48 = vpop.f32.mrb[67].mxu1  ;;  %3180 = vmatmul.mubr.bf16.gmra.mrb[124].mxu1 %v1704_v42 }
 0x37a   : > { %v1814_v50 = vadd.f32 %v4062_v16, %v1813_v48 }
 0x37b   : > { %v2760_v51 = vpack.c.bf16 %v1822_v38, %v1819_v47 }
 0x37c   : > { %v2755_v52 = vpack.c.bf16 %v1814_v50, %v1811_v49 }
 0x37d   : > { %2912 = vst [vmem:[%s4069_s29 + $0x8] sm:$0xff] %v2760_v51  }
 0x37e   : > { %2756 = vst [vmem:[%s4069_s29] sm:$0xff] %v2755_v52   ;;  %v3125_v53 = vpop.f32.mrb[68].mxu1 }
 0x37f   : > { %v1826_v54 = vpop.f32.mrb[69].mxu1  ;;  %v1835_v56 = vadd.f32 %v3125_v53, %v4062_v16 }
 0x380   : > { %v3126_v55 = vpop.f32.mrb[70].mxu1  ;;  %v1827_v59 = vadd.f32 %v4062_v16, %v1826_v54 }
 0x381   : > { %v1838_v57 = vadd.f32 %v3126_v55, %v4062_v16  ;;  %v1829_v58 = vpop.f32.mrb[71].mxu1 }
 0x382   : > { %v1830_v60 = vadd.f32 %v4062_v16, %v1829_v58 }
 0x383   : > { %v2770_v61 = vpack.c.bf16 %v1838_v57, %v1835_v56 }
 0x384   : > { %v2765_v62 = vpack.c.bf16 %v1830_v60, %v1827_v59 }
 0x385   : > { %2914 = vst [vmem:[%s4069_s29 + $0x18] sm:$0xff] %v2770_v61  }
 0x386   : > { %2913 = vst [vmem:[%s4069_s29 + $0x10] sm:$0xff] %v2765_v62   ;;  %v3129_v63 = vpop.f32.mrb[72].mxu1 }
 0x387   : > { %v1842_v0 = vpop.f32.mrb[73].mxu1  ;;  %v1851_v2 = vadd.f32 %v3129_v63, %v4062_v16 }
 0x388   : > { %v3130_v1 = vpop.f32.mrb[74].mxu1  ;;  %v1843_v5 = vadd.f32 %v4062_v16, %v1842_v0 }
 0x389   : > { %v1854_v3 = vadd.f32 %v3130_v1, %v4062_v16  ;;  %v1845_v4 = vpop.f32.mrb[75].mxu1 }
 0x38a   : > { %v1846_v6 = vadd.f32 %v4062_v16, %v1845_v4 }
 0x38b   : > { %v2780_v7 = vpack.c.bf16 %v1854_v3, %v1851_v2 }
 0x38c   : > { %v2775_v8 = vpack.c.bf16 %v1846_v6, %v1843_v5 }
 0x38d   : > { %2916 = vst [vmem:[%s4069_s29 + $0x28] sm:$0xff] %v2780_v7  }
 0x38e   : > { %2915 = vst [vmem:[%s4069_s29 + $0x20] sm:$0xff] %v2775_v8   ;;  %v3133_v9 = vpop.f32.mrb[76].mxu1 }
 0x38f   : > { %v1858_v10 = vpop.f32.mrb[77].mxu1  ;;  %v1867_v12 = vadd.f32 %v3133_v9, %v4062_v16 }
 0x390   : > { %v3134_v11 = vpop.f32.mrb[78].mxu1  ;;  %v1859_v15 = vadd.f32 %v4062_v16, %v1858_v10 }
 0x391   : > { %v1870_v13 = vadd.f32 %v3134_v11, %v4062_v16  ;;  %v1861_v14 = vpop.f32.mrb[79].mxu1 }
 0x392   : > { %v1862_v17 = vadd.f32 %v4062_v16, %v1861_v14 }
 0x393   : > { %v2790_v18 = vpack.c.bf16 %v1870_v13, %v1867_v12 }
 0x394   : > { %v2785_v19 = vpack.c.bf16 %v1862_v17, %v1859_v15 }
 0x395   : > { %2918 = vst [vmem:[%s4069_s29 + $0x38] sm:$0xff] %v2790_v18  }
 0x396   : > { %2917 = vst [vmem:[%s4069_s29 + $0x30] sm:$0xff] %v2785_v19  }
 0x39c   : > { %v3137_v20 = vpop.f32.mrb[80].mxu1 }
 0x39d   : > { %v1874_v21 = vpop.f32.mrb[81].mxu1  ;;  %v1883_v23 = vadd.f32 %v3137_v20, %v4062_v16 }
 0x39e   : > { %v3138_v22 = vpop.f32.mrb[82].mxu1  ;;  %v1875_v26 = vadd.f32 %v4062_v16, %v1874_v21 }
 0x39f   : > { %v1886_v24 = vadd.f32 %v3138_v22, %v4062_v16  ;;  %v1877_v25 = vpop.f32.mrb[83].mxu1 }
 0x3a0   : > { %v1878_v27 = vadd.f32 %v4062_v16, %v1877_v25 }
 0x3a1   : > { %v2800_v28 = vpack.c.bf16 %v1886_v24, %v1883_v23 }
 0x3a2   : > { %v2795_v29 = vpack.c.bf16 %v1878_v27, %v1875_v26 }
 0x3a3   : > { %2920 = vst [vmem:[%s4069_s29 + $0x48] sm:$0xff] %v2800_v28  }
 0x3a4   : > { %2919 = vst [vmem:[%s4069_s29 + $0x40] sm:$0xff] %v2795_v29  }
 0x3ac   : > { %v3141_v30 = vpop.f32.mrb[84].mxu1 }
 0x3ad   : > { %v1890_v31 = vpop.f32.mrb[85].mxu1  ;;  %v1899_v33 = vadd.f32 %v3141_v30, %v4062_v16 }
 0x3ae   : > { %v3142_v32 = vpop.f32.mrb[86].mxu1  ;;  %v1891_v36 = vadd.f32 %v4062_v16, %v1890_v31 }
 0x3af   : > { %v1902_v34 = vadd.f32 %v3142_v32, %v4062_v16  ;;  %v1893_v35 = vpop.f32.mrb[87].mxu1 }
 0x3b0   : > { %v1894_v37 = vadd.f32 %v4062_v16, %v1893_v35 }
 0x3b1   : > { %v2810_v39 = vpack.c.bf16 %v1902_v34, %v1899_v33 }
 0x3b2   : > { %v2805_v40 = vpack.c.bf16 %v1894_v37, %v1891_v36 }
 0x3b3   : > { %2922 = vst [vmem:[%s4069_s29 + $0x58] sm:$0xff] %v2810_v39  }
 0x3b4   : > { %2921 = vst [vmem:[%s4069_s29 + $0x50] sm:$0xff] %v2805_v40  }
 0x3bc   : > { %v3145_v41 = vpop.f32.mrb[88].mxu1 }
 0x3bd   : > { %v1906_v42 = vpop.f32.mrb[89].mxu1  ;;  %v1915_v44 = vadd.f32 %v3145_v41, %v4062_v16 }
 0x3be   : > { %v3146_v43 = vpop.f32.mrb[90].mxu1  ;;  %v1907_v47 = vadd.f32 %v4062_v16, %v1906_v42 }
 0x3bf   : > { %v1918_v45 = vadd.f32 %v3146_v43, %v4062_v16  ;;  %v1909_v46 = vpop.f32.mrb[91].mxu1 }
 0x3c0   : > { %v1910_v38 = vadd.f32 %v4062_v16, %v1909_v46 }
 0x3c1   : > { %v2820_v48 = vpack.c.bf16 %v1918_v45, %v1915_v44 }
 0x3c2   : > { %v2815_v49 = vpack.c.bf16 %v1910_v38, %v1907_v47 }
 0x3c3   : > { %2924 = vst [vmem:[%s4069_s29 + $0x68] sm:$0xff] %v2820_v48  }
 0x3c4   : > { %2923 = vst [vmem:[%s4069_s29 + $0x60] sm:$0xff] %v2815_v49  }
 0x3cc   : > { %v3149_v50 = vpop.f32.mrb[92].mxu1 }
 0x3cd   : > { %v1922_v51 = vpop.f32.mrb[93].mxu1  ;;  %v1931_v53 = vadd.f32 %v3149_v50, %v4062_v16 }
 0x3ce   : > { %v3150_v52 = vpop.f32.mrb[94].mxu1  ;;  %v1923_v56 = vadd.f32 %v4062_v16, %v1922_v51 }
 0x3cf   : > { %v1934_v54 = vadd.f32 %v3150_v52, %v4062_v16  ;;  %v1925_v55 = vpop.f32.mrb[95].mxu1 }
 0x3d0   : > { %v1926_v57 = vadd.f32 %v4062_v16, %v1925_v55 }
 0x3d1   : > { %v2830_v58 = vpack.c.bf16 %v1934_v54, %v1931_v53 }
 0x3d2   : > { %v2825_v59 = vpack.c.bf16 %v1926_v57, %v1923_v56 }
 0x3d3   : > { %2926 = vst [vmem:[%s4069_s29 + $0x78] sm:$0xff] %v2830_v58  }
 0x3d4   : > { %2925 = vst [vmem:[%s4069_s29 + $0x70] sm:$0xff] %v2825_v59  }
 0x3dc   : > { %v3153_v60 = vpop.f32.mrb[96].mxu1 }
 0x3dd   : > { %v1938_v61 = vpop.f32.mrb[97].mxu1  ;;  %v1947_v63 = vadd.f32 %v3153_v60, %v4062_v16 }
 0x3de   : > { %v3154_v62 = vpop.f32.mrb[98].mxu1  ;;  %v1939_v2 = vadd.f32 %v4062_v16, %v1938_v61 }
 0x3df   : > { %v1950_v0 = vadd.f32 %v3154_v62, %v4062_v16  ;;  %v1941_v1 = vpop.f32.mrb[99].mxu1 }
 0x3e0   : > { %v1942_v3 = vadd.f32 %v4062_v16, %v1941_v1 }
 0x3e1   : > { %v2840_v4 = vpack.c.bf16 %v1950_v0, %v1947_v63 }
 0x3e2   : > { %v2835_v5 = vpack.c.bf16 %v1942_v3, %v1939_v2 }
 0x3e3   : > { %2928 = vst [vmem:[%s4069_s29 + $0x88] sm:$0xff] %v2840_v4  }
 0x3e4   : > { %2927 = vst [vmem:[%s4069_s29 + $0x80] sm:$0xff] %v2835_v5  }
 0x3ec   : > { %v3157_v6 = vpop.f32.mrb[100].mxu1 }
 0x3ed   : > { %v1954_v7 = vpop.f32.mrb[101].mxu1  ;;  %v1963_v9 = vadd.f32 %v3157_v6, %v4062_v16 }
 0x3ee   : > { %v3158_v8 = vpop.f32.mrb[102].mxu1  ;;  %v1955_v12 = vadd.f32 %v4062_v16, %v1954_v7 }
 0x3ef   : > { %v1966_v10 = vadd.f32 %v3158_v8, %v4062_v16  ;;  %v1957_v11 = vpop.f32.mrb[103].mxu1 }
 0x3f0   : > { %v1958_v13 = vadd.f32 %v4062_v16, %v1957_v11 }
 0x3f1   : > { %v2850_v14 = vpack.c.bf16 %v1966_v10, %v1963_v9 }
 0x3f2   : > { %v2845_v15 = vpack.c.bf16 %v1958_v13, %v1955_v12 }
 0x3f3   : > { %2930 = vst [vmem:[%s4069_s29 + $0x98] sm:$0xff] %v2850_v14  }
 0x3f4   : > { %2929 = vst [vmem:[%s4069_s29 + $0x90] sm:$0xff] %v2845_v15  }
 0x3fc   : > { %v3161_v17 = vpop.f32.mrb[104].mxu1 }
 0x3fd   : > { %v1970_v18 = vpop.f32.mrb[105].mxu1  ;;  %v1979_v20 = vadd.f32 %v3161_v17, %v4062_v16 }
 0x3fe   : > { %v3162_v19 = vpop.f32.mrb[106].mxu1  ;;  %v1971_v23 = vadd.f32 %v4062_v16, %v1970_v18 }
 0x3ff   : > { %v1982_v21 = vadd.f32 %v3162_v19, %v4062_v16  ;;  %v1973_v22 = vpop.f32.mrb[107].mxu1 }
 0x400   : > { %v1974_v24 = vadd.f32 %v4062_v16, %v1973_v22 }
 0x401   : > { %v2860_v25 = vpack.c.bf16 %v1982_v21, %v1979_v20 }
 0x402   : > { %v2855_v26 = vpack.c.bf16 %v1974_v24, %v1971_v23 }
 0x403   : > { %2932 = vst [vmem:[%s4069_s29 + $0xa8] sm:$0xff] %v2860_v25  }
 0x404   : > { %2931 = vst [vmem:[%s4069_s29 + $0xa0] sm:$0xff] %v2855_v26  }
 0x40c   : > { %v3165_v27 = vpop.f32.mrb[108].mxu1 }
 0x40d   : > { %v1986_v28 = vpop.f32.mrb[109].mxu1  ;;  %v1995_v30 = vadd.f32 %v3165_v27, %v4062_v16 }
 0x40e   : > { %v3166_v29 = vpop.f32.mrb[110].mxu1  ;;  %v1987_v33 = vadd.f32 %v4062_v16, %v1986_v28 }
 0x40f   : > { %v1998_v31 = vadd.f32 %v3166_v29, %v4062_v16  ;;  %v1989_v32 = vpop.f32.mrb[111].mxu1 }
 0x410   : > { %v1990_v34 = vadd.f32 %v4062_v16, %v1989_v32 }
 0x411   : > { %v2870_v35 = vpack.c.bf16 %v1998_v31, %v1995_v30 }
 0x412   : > { %v2865_v36 = vpack.c.bf16 %v1990_v34, %v1987_v33 }
 0x413   : > { %2934 = vst [vmem:[%s4069_s29 + $0xb8] sm:$0xff] %v2870_v35  }
 0x414   : > { %2933 = vst [vmem:[%s4069_s29 + $0xb0] sm:$0xff] %v2865_v36  }
 0x41c   : > { %v3169_v37 = vpop.f32.mrb[112].mxu1 }
 0x41d   : > { %v2002_v39 = vpop.f32.mrb[113].mxu1  ;;  %v2011_v41 = vadd.f32 %v3169_v37, %v4062_v16 }
 0x41e   : > { %v3170_v40 = vpop.f32.mrb[114].mxu1  ;;  %v2003_v44 = vadd.f32 %v4062_v16, %v2002_v39 }
 0x41f   : > { %v2014_v42 = vadd.f32 %v3170_v40, %v4062_v16  ;;  %v2005_v43 = vpop.f32.mrb[115].mxu1 }
 0x420   : > { %v2006_v45 = vadd.f32 %v4062_v16, %v2005_v43 }
 0x421   : > { %v2880_v46 = vpack.c.bf16 %v2014_v42, %v2011_v41 }
 0x422   : > { %v2875_v47 = vpack.c.bf16 %v2006_v45, %v2003_v44 }
 0x423   : > { %2936 = vst [vmem:[%s4069_s29 + $0xc8] sm:$0xff] %v2880_v46  }
 0x424   : > { %2935 = vst [vmem:[%s4069_s29 + $0xc0] sm:$0xff] %v2875_v47  }
 0x42c   : > { %v3173_v38 = vpop.f32.mrb[116].mxu1 }
 0x42d   : > { %v2018_v48 = vpop.f32.mrb[117].mxu1  ;;  %v2027_v50 = vadd.f32 %v3173_v38, %v4062_v16 }
 0x42e   : > { %v3174_v49 = vpop.f32.mrb[118].mxu1  ;;  %v2019_v53 = vadd.f32 %v4062_v16, %v2018_v48 }
 0x42f   : > { %v2030_v51 = vadd.f32 %v3174_v49, %v4062_v16  ;;  %v2021_v52 = vpop.f32.mrb[119].mxu1 }
 0x430   : > { %v2022_v54 = vadd.f32 %v4062_v16, %v2021_v52 }
 0x431   : > { %v2890_v55 = vpack.c.bf16 %v2030_v51, %v2027_v50 }
 0x432   : > { %v2885_v56 = vpack.c.bf16 %v2022_v54, %v2019_v53 }
 0x433   : > { %2938 = vst [vmem:[%s4069_s29 + $0xd8] sm:$0xff] %v2890_v55  }
 0x434   : > { %2937 = vst [vmem:[%s4069_s29 + $0xd0] sm:$0xff] %v2885_v56  }
 0x43c   : > { %v3177_v57 = vpop.f32.mrb[120].mxu1 }
 0x43d   : > { %v2034_v58 = vpop.f32.mrb[121].mxu1  ;;  %v2043_v60 = vadd.f32 %v3177_v57, %v4062_v16 }
 0x43e   : > { %v3178_v59 = vpop.f32.mrb[122].mxu1  ;;  %v2035_v63 = vadd.f32 %v4062_v16, %v2034_v58 }
 0x43f   : > { %v2046_v61 = vadd.f32 %v3178_v59, %v4062_v16  ;;  %v2037_v62 = vpop.f32.mrb[123].mxu1 }
 0x440   : > { %v2038_v0 = vadd.f32 %v4062_v16, %v2037_v62 }
 0x441   : > { %v2900_v1 = vpack.c.bf16 %v2046_v61, %v2043_v60 }
 0x442   : > { %v2895_v2 = vpack.c.bf16 %v2038_v0, %v2035_v63 }
 0x443   : > { %2940 = vst [vmem:[%s4069_s29 + $0xe8] sm:$0xff] %v2900_v1  }
 0x444   : > { %2939 = vst [vmem:[%s4069_s29 + $0xe0] sm:$0xff] %v2895_v2  }
 0x44c   : > { %v3181_v3 = vpop.f32.mrb[124].mxu1 }
 0x44d   : > { %v2050_v4 = vpop.f32.mrb[125].mxu1  ;;  %v2059_v6 = vadd.f32 %v3181_v3, %v4062_v16 }
 0x44e   : > { %v3182_v5 = vpop.f32.mrb[126].mxu1  ;;  %v2051_v9 = vadd.f32 %v4062_v16, %v2050_v4 }
 0x44f   : > { %v2062_v7 = vadd.f32 %v3182_v5, %v4062_v16  ;;  %v2053_v8 = vpop.f32.mrb[127].mxu1 }
 0x450   : > { %v2054_v10 = vadd.f32 %v4062_v16, %v2053_v8 }
 0x451   : > { %v2910_v11 = vpack.c.bf16 %v2062_v7, %v2059_v6 }
 0x452   : > { %v2905_v12 = vpack.c.bf16 %v2054_v10, %v2051_v9 }
 0x453   : > { %2942 = vst [vmem:[%s4069_s29 + $0xf8] sm:$0xff] %v2910_v11  }
 0x454   : > { %2941 = vst [vmem:[%s4069_s29 + $0xf0] sm:$0xff] %v2905_v12  }
 0x455   : > { %3522 = shalt.err (!%p3519_p4)
}
 0x456   : > { %s3523_s10 = scalar_lea.hbm %s4166_s13, 4096  ;;  %s3527_s15 = scalar_lea.hbm %s4221_s7, 8192 }
 0x457   : > { %p3524_p9 = scmp.ne.s32.totalorder %s4166_s13, %s3523_s10  ;;  %p3528_p8 = scmp.lt.u32.totalorder %s4166_s13, %s4221_s7 }
 0x458   : > { %p3529_p13 = scmp.lt.u32.totalorder %s3527_s15, %s3523_s10  ;;  %p3531_p10 = scmp.lt.u32.totalorder %s3523_s10, %s4166_s13 }
 0x459   : > { %p3525_p0 = pnand %p3524_p9, %p3791_p5 }
 0x45a   : > { %p3530_p6 = por %p3529_p13, %p3528_p8 }
 0x45b   : > { %p3526_p11 = pneg %p3525_p0 }
 0x45c   : > { %p3532_p3 = por %p3531_p10, %p3530_p6 }
 0x45e   : > { %p3533_p7 = pnand %p3532_p3, %p3526_p11 }
 0x460   : > { %3536 = shalt.err (!%p3533_p7)
}
 0x461   : > { %s3595_s17 = smov 64   ;;  %s3596_s16 = smov 4  }
 0x462   : > { %3197 = dma.vmem_to_hbm [thread:$0]  (%p3791_p5), %s4168_s8, 4096, %s4166_s13, %s2386_s28, %s3595_s17, %s3595_s17, %s3596_s16  }
 0x463 PF: > { %s4241_s20 = sld [smem:[#allocation15_spill]]  ;;  %s2414_s30 = sand.u32 1, %s3571_s24  }
 0x464   : > { %p4243_p1 = scmp.ge.s32.totalorder %s3583_s27, 2  ;;  %s2415_s9 = scalar_lea.sflag [#allocation4], %s2414_s30 }
 0x469   : > { %p4242_p12 = scmp.ne.s32.totalorder %s4241_s20, 0 }
 0x46b   : > { %p3214_p2 = pnand %p4243_p1, %p4242_p12 }
 0x46d   : > { %3566 = dma.done.wait (!%p3214_p2), %s2415_s9, 4096  }
 0x46e   : > { %3568 = vsyncadd (!%p3214_p2), %s2415_s9, 4294963200  ;;  %p22_p4 = scmp.ge.s32.totalorder %s3777_s22, 4   ;;  %s4244_s24 = smov %s3575_s25 }
 0x46f   : > { %s4245_s25 = smov %s3579_s26  ;;  %s4246_s26 = smov %s3787_s18 }
 0x470   : > { %s4247_s27 = smov %s3777_s22  ;;  %24 = sbr.rel (!%p22_p4) target bundleno = 7 (0x7), region = 105 }
 0x477   :  { %2420 = vsyncpa [#allocation3], 1 }
 0x478   :  { %2422 = vsyncpa [#allocation3 + $0x1], 1 }
 0x479   :  { %2423 = vsyncpa [#allocation6], 1 }
 0x47a   :  { %2424 = vsyncpa [#allocation9], 1 }
 0x47b   :  { %2425 = vsyncpa [#allocation4], 1 }
 0x47c   :  { %2427 = vsyncpa [#allocation4 + $0x1], 1 }

</bundles_post_ra>
